<compile_context>
chip_gen: v6e
topology: v6e:2x2x1
jax: 0.10.0
libtpu: 0.0.40
codegen_flags: <defaults>
</compile_context>

<pallas_src>
import jax
import jax.numpy as jnp
from jax.experimental import pallas as pl
from jax.experimental.pallas import tpu as pltpu


def _mul_conv1x1_kernel(w_ref, s_ref, x_ref, o_ref):
    # w_ref: (Cout, Cin) bf16 -- 1x1-conv weight, resident bf16, native layout
    # s_ref: (1, Cin)    f32  -- per-channel scale (x198), lane-dense
    # x_ref: (Cin, HW)   f32  -- activations, channel-major (native NCHW view)
    # o_ref: (Cout, HW)  f32
    ws = (w_ref[...] * s_ref[...]).astype(jnp.bfloat16)   # W * diag(s): VPU, free
    x = x_ref[...].astype(jnp.bfloat16)                   # cast for MXU bf16 path
    o_ref[...] = jnp.dot(ws, x, preferred_element_type=jnp.float32)


def prepare_conv_weight(weight_oihw):
    """One-time (model-init) prep: (Cout, Cin, 1, 1) f32 -> (Cout, Cin) bf16.

    Done once, outside the jitted hot path, so no per-call cast / reshape op.
    """
    cout, cin = weight_oihw.shape[0], weight_oihw.shape[1]
    return weight_oihw.reshape(cout, cin).astype(jnp.bfloat16)


@jax.jit
def mul_conv1x1(x198, x193, w_bf16):
    """Equivalent of: conv2d_1x1(x198 * x193), bias=False.

    x198: (1, C, 1, 1) f32, x193: (1, C, H, W) f32, w_bf16: (Cout, Cin) bf16
    (prepared once via prepare_conv_weight). Returns (1, Cout, H, W) f32.
    """
    n, c, h, w = x193.shape
    cout, cin = w_bf16.shape
    # TODO(synk): N > 1 would need a grid over batch (NCHW reshape to (C, N*H*W)
    # is not a contiguous view); the reference module runs N == 1.
    assert n == 1 and cin == c

    hw = h * w
    # Contiguous views only -- no HBM transposes, no per-call casts.
    x_mat = x193.reshape(c, hw)     # (Cin, HW)
    scale = x198.reshape(1, c)      # (1, Cin), lane-dense

    flops = 2 * cout * cin * hw + cout * cin
    bytes_accessed = (cout * cin * 2) + (c * hw * 4) + (c * 4) + (cout * hw * 4)

    out_mat = pl.pallas_call(
        _mul_conv1x1_kernel,
        out_shape=jax.ShapeDtypeStruct((cout, hw), jnp.float32),
        in_specs=[
            pl.BlockSpec((cout, cin), lambda: (0, 0)),
            pl.BlockSpec((1, c), lambda: (0, 0)),
            pl.BlockSpec((c, hw), lambda: (0, 0)),
        ],
        out_specs=pl.BlockSpec((cout, hw), lambda: (0, 0)),
        cost_estimate=pl.CostEstimate(
            flops=flops, transcendentals=0, bytes_accessed=bytes_accessed),
        compiler_params=pltpu.CompilerParams(
            vmem_limit_bytes=16 * 1024 * 1024),
    )(w_bf16, scale, x_mat)

    # (Cout, HW) -> (1, Cout, H, W): contiguous view, no transpose.
    return out_mat.reshape(1, cout, h, w)


if __name__ == "__main__":
    key = jax.random.PRNGKey(0)
    k1, k2, k3 = jax.random.split(key, 3)

    N, C, H, W = 1, 440, 7, 7
    x193 = jax.random.normal(k1, (N, C, H, W), dtype=jnp.float32)
    x198 = jax.random.normal(k2, (N, C, 1, 1), dtype=jnp.float32)
    # deterministic synthetic Conv2d(440, 440, 1, bias=False) weight
    conv_w = jax.random.normal(k3, (C, C, 1, 1), dtype=jnp.float32) * 0.05

    # One-time weight prep (model init; NOT in the per-call hot path).
    w_bf16 = prepare_conv_weight(conv_w)

    out = mul_conv1x1(x198, x193, w_bf16)
    jax.block_until_ready(out)

    # Reference with identical bf16 operand rounding (f32 accumulate) so the
    # comparison isolates kernel correctness from the intentional bf16 quantization.
    ws_ref = (
        (w_bf16.astype(jnp.float32) * x198.reshape(1, C))
        .astype(jnp.bfloat16)
        .astype(jnp.float32)
    )
    x_ref = x193.reshape(C, H * W).astype(jnp.bfloat16).astype(jnp.float32)
    ref = jnp.dot(ws_ref, x_ref, precision=jax.lax.Precision.HIGHEST).reshape(N, C, H, W)

    assert out.shape == (N, C, H, W)
    assert jnp.allclose(out, ref, atol=1e-2, rtol=1e-2)

    print("KERNEL_OK")
</pallas_src>

<mosaic_0001>
module attributes {stable_mosaic.version = 11 : i64} {
  func.func @_mul_conv1x1_kernel(%arg0: memref<440x440xbf16, #tpu.memory_space<vmem>>, %arg1: memref<1x440xf32, #tpu.memory_space<vmem>>, %arg2: memref<440x49xf32, #tpu.memory_space<vmem>>, %arg3: memref<440x49xf32, #tpu.memory_space<vmem>>) attributes {dimension_semantics = [], scalar_prefetch = 0 : i64, scratch_operands = 0 : i64, tpu.core_type = #tpu.core_type<tc>} {
    %c0 = arith.constant 0 : index
    %c0_0 = arith.constant 0 : index
    %0 = vector.load %arg0[%c0, %c0_0] : memref<440x440xbf16, #tpu.memory_space<vmem>>, vector<440x440xbf16>
    %c0_1 = arith.constant 0 : index
    %c0_2 = arith.constant 0 : index
    %1 = vector.load %arg1[%c0_1, %c0_2] : memref<1x440xf32, #tpu.memory_space<vmem>>, vector<1x440xf32>
    %2 = arith.extf %0 : vector<440x440xbf16> to vector<440x440xf32>
    %3 = vector.broadcast %1 : vector<1x440xf32> to vector<440x440xf32>
    %4 = arith.mulf %2, %3 : vector<440x440xf32>
    %5 = arith.truncf %4 : vector<440x440xf32> to vector<440x440xbf16>
    %c0_3 = arith.constant 0 : index
    %c0_4 = arith.constant 0 : index
    %6 = vector.load %arg2[%c0_3, %c0_4] : memref<440x49xf32, #tpu.memory_space<vmem>>, vector<440x49xf32>
    %7 = arith.truncf %6 : vector<440x49xf32> to vector<440x49xbf16>
    %cst = arith.constant dense<0.000000e+00> : vector<440x49xf32>
    %8 = tpu.matmul %5, %7, %cst {dimension_numbers = #tpu.dot_dimension_numbers<[1], [0], [0], [1], [0, 0, 1, 1], [], []>} : vector<440x440xbf16>, vector<440x49xbf16>, vector<440x49xf32> -> vector<440x49xf32>
    %c0_5 = arith.constant 0 : index
    %c0_6 = arith.constant 0 : index
    %9 = vector.load %arg3[%c0_5, %c0_6] : memref<440x49xf32, #tpu.memory_space<vmem>>, vector<440x49xf32>
    tpu.vector_store %arg3[%c0_5, %c0_6], %8 {strides = array<i32>} : memref<440x49xf32, #tpu.memory_space<vmem>>, vector<440x49xf32>,
    return
  }
}

</mosaic_0001>

<bundles_post_ra>
// kernel: mul_conv1x1.1
= control target key start
LH: loop header
LB: loop body
LE: loop exit
PB: predicated region body
PF: predicated region fallthrough
CT: control target
= control target key end

     0   :  { %v1472_v0 = vmov 0   ;;  %v347_v18 = vlaneseq  ;;  %vm782_vm0 = vcmask 457728   ;;  %vm867_vm1 = vcmask 1043456   ;;  %s2523_s2 = inlined_call_operand.vmem [shape: f32[440,49], index: 2, kind: input, shape index: {}]   ;;  %s2524_s0 = inlined_call_operand.vmem [shape: bf16[440,440], index: 0, kind: input, shape index: {}]   ;;  %s2525_s1 = inlined_call_operand.vmem [shape: f32[1,440], index: 1, kind: input, shape index: {}]   ;;  %s2526_s3 = inlined_call_operand.vmem [shape: f32[440,49], index: 3, kind: output, shape index: {}]  }
   0x1   :  { %871 = vmatprep.subr.bf16.mxu0 %v1472_v0  ;;  %v713_v1 = vld [vmem:[%s2523_s2 + $0x70] sm:$0xff]  ;;  %v714_v2 = vld [vmem:[%s2523_s2 + $0x78] sm:$0xff]  ;;  %v711_v3 = vld [vmem:[%s2523_s2 + $0x60] sm:$0xff]  ;;  %1127 = vmatprep.subr.bf16.mxu1 %v1472_v0  ;;  %vm1383_vm2 = vcmask 400384  }
   0x2   :  { %v761_v4 = vpack.c.bf16 %v714_v2, %v713_v1  ;;  %v712_v5 = vld [vmem:[%s2523_s2 + $0x68] sm:$0xff]  ;;  %v745_v6 = vld [vmem:[%s2523_s2 + $0x170] sm:$0xff]  ;;  %v746_v7 = vld [vmem:[%s2523_s2 + $0x178] sm:$0xff]  ;;  %v1547_v25 = vshrl.u32 %v347_v18, 7 }
   0x3   :  { %v760_v8 = vpack.c.bf16 %v712_v5, %v711_v3  ;;  %v777_v9 = vpack.c.bf16 %v746_v7, %v745_v6  ;;  %v743_v10 = vld [vmem:[%s2523_s2 + $0x160] sm:$0xff]  ;;  %v744_v11 = vld [vmem:[%s2523_s2 + $0x168] sm:$0xff]  ;;  %v709_v12 = vld [vmem:[%s2523_s2 + $0x50] sm:$0xff] }
   0x4   :  { %872 = vmatpush1.bf16.msra.mxu0 %v761_v4  ;;  %v710_v13 = vld [vmem:[%s2523_s2 + $0x58] sm:$0xff]  ;;  %v776_v14 = vpack.c.bf16 %v744_v11, %v743_v10  ;;  %v741_v15 = vld [vmem:[%s2523_s2 + $0x150] sm:$0xff]  ;;  %v707_v19 = vld [vmem:[%s2523_s2 + $0x40] sm:$0xff]  ;;  %v361_v32 = vsub.s32 3, %v1547_v25  ;;  %v353_v42 = vsub.s32 1, %v1547_v25 }
   0x5   :  { %873 = vmatprep.subr.bf16.mxu0 %v1472_v0  ;;  %1128 = vmatpush1.bf16.msra.mxu1 %v777_v9  ;;  %v742_v16 = vld [vmem:[%s2523_s2 + $0x158] sm:$0xff]  ;;  %v759_v17 = vpack.c.bf16 %v710_v13, %v709_v12  ;;  %v708_v20 = vld [vmem:[%s2523_s2 + $0x48] sm:$0xff]  ;;  %v739_v22 = vld [vmem:[%s2523_s2 + $0x140] sm:$0xff] }
   0x6   :  { %1129 = vmatprep.subr.bf16.mxu1 %v1472_v0  ;;  %v775_v21 = vpack.c.bf16 %v742_v16, %v741_v15  ;;  %v740_v23 = vld [vmem:[%s2523_s2 + $0x148] sm:$0xff]  ;;  %v758_v24 = vpack.c.bf16 %v708_v20, %v707_v19  ;;  %v705_v26 = vld [vmem:[%s2523_s2 + $0x30] sm:$0xff]  ;;  %v706_v27 = vld [vmem:[%s2523_s2 + $0x38] sm:$0xff]  ;;  %v357_v20 = vsub.s32 2, %v1547_v25 }
   0x7   :  { %v774_v28 = vpack.c.bf16 %v740_v23, %v739_v22  ;;  %v737_v29 = vld [vmem:[%s2523_s2 + $0x130] sm:$0xff]  ;;  %v738_v30 = vld [vmem:[%s2523_s2 + $0x138] sm:$0xff]  ;;  %v757_v31 = vpack.c.bf16 %v706_v27, %v705_v26  ;;  %v703_v33 = vld [vmem:[%s2523_s2 + $0x20] sm:$0xff] }
   0x8   :  { %874 = vmatpush1.bf16.msra.mxu0 %v760_v8  ;;  %v704_v34 = vld [vmem:[%s2523_s2 + $0x28] sm:$0xff]  ;;  %v773_v35 = vpack.c.bf16 %v738_v30, %v737_v29  ;;  %v735_v36 = vld [vmem:[%s2523_s2 + $0x120] sm:$0xff]  ;;  %v1586_v39 = vld [vmem:[%s2524_s0 + $0x18] sm:$0xff] }
   0x9   :  { %875 = vmatprep.subr.bf16.mxu0 %v1472_v0  ;;  %1130 = vmatpush1.bf16.msra.mxu1 %v776_v14  ;;  %v1577_v37 = vld [vmem:[%s2524_s0 + $0x8] sm:$0xff]  ;;  %v1591_v40 = vld [vmem:[%s2525_s1] sm:$0xf]  ;;  %v756_v43 = vpack.c.bf16 %v704_v34, %v703_v33  ;;  %v133_v44 = vunpack.c.h.bf16 %v1586_v39  ;;  %v1607_v47 = vld [vmem:[%s2524_s0 + $0x10] sm:$0xff] }
   0xa   :  { %1131 = vmatprep.subr.bf16.mxu1 %v1472_v0  ;;  %v736_v38 = vld [vmem:[%s2523_s2 + $0x128] sm:$0xff]  ;;  %v129_v41 = vunpack.c.h.bf16 %v1577_v37  ;;  %v1597_v45 = vrot.slane %v1591_v40, %v361_v32  ;;  %v1602_v46 = vld [vmem:[%s2524_s0] sm:$0xff]  ;;  %v701_v48 = vld [vmem:[%s2523_s2 + $0x10] sm:$0xff]  ;;  %v131_v56 = vunpack.c.h.bf16 %v1607_v47  ;;  %v1628_v57 = vrot.slane %v1591_v40, %v353_v42 }
   0xb   :  { %v702_v49 = vld [vmem:[%s2523_s2 + $0x18] sm:$0xff]  ;;  %v127_v50 = vunpack.c.h.bf16 %v1602_v46  ;;  %v772_v51 = vpack.c.bf16 %v736_v38, %v735_v36  ;;  %v733_v54 = vld [vmem:[%s2523_s2 + $0x110] sm:$0xff]  ;;  %v699_v60 = vld [vmem:[%s2523_s2] sm:$0xff]  ;;  %v128_v30 = vunpack.c.l.bf16 %v1577_v37  ;;  %v1703_v32 = vrot.slane %v1591_v40, %v357_v20 }
   0xc   :  { %876 = vmatpush1.bf16.msra.mxu0 %v759_v17  ;;  %v370_v52 = vmul.f32 %v1597_v45, %v129_v41  ;;  %v374_v53 = vmul.f32 %v1597_v45, %v133_v44  ;;  %v734_v55 = vld [vmem:[%s2523_s2 + $0x118] sm:$0xff]  ;;  %v755_v58 = vpack.c.bf16 %v702_v49, %v701_v48  ;;  %v700_v61 = vld [vmem:[%s2523_s2 + $0x8] sm:$0xff]  ;;  %v372_v63 = vmul.f32 %v1628_v57, %v131_v56  ;;  %v731_v2 = vld [vmem:[%s2523_s2 + $0x100] sm:$0xff] }
   0xd   :  { %877 = vmatprep.subr.bf16.mxu0 %v1472_v0  ;;  %1132 = vmatpush1.bf16.msra.mxu1 %v775_v21  ;;  %v368_v62 = vmul.f32 %v1628_v57, %v127_v50  ;;  %v771_v1 = vpack.c.bf16 %v734_v55, %v733_v54  ;;  %v732_v3 = vld [vmem:[%s2523_s2 + $0x108] sm:$0xff]  ;;  %v754_v5 = vpack.c.bf16 %v700_v61, %v699_v60  ;;  %v753_v6 = vld [vmem:[%s2523_s2 + $0x1b0] sm:$0xff]  ;;  %v730_v8 = vld [vmem:[%s2523_s2 + $0xf8] sm:$0xff] }
   0xe   :  { %1133 = vmatprep.subr.bf16.mxu1 %v1472_v0  ;;  %v590_v59 = vpack.c.bf16 %v374_v53, %v370_v52  ;;  %v729_v7 = vld [vmem:[%s2523_s2 + $0xf0] sm:$0xff]  ;;  %v770_v9 = vpack.c.bf16 %v732_v3, %v731_v2  ;;  %v781_v10 = vpack.c.bf16 %v753_v6, %v753_v6  ;;  %v727_v12 = vld [vmem:[%s2523_s2 + $0xe0] sm:$0xff]  ;;  %v728_v13 = vld [vmem:[%s2523_s2 + $0xe8] sm:$0xff]  ;;  %v369_v42 = vmul.f32 %v1703_v32, %v128_v30 }
   0xf   :  { %v588_v4 = vpack.c.bf16 %v372_v63, %v368_v62  ;;  %v769_v11 = vpack.c.bf16 %v730_v8, %v729_v7  ;;  %v751_v15 = vld [vmem:[%s2523_s2 + $0x1a0] sm:$0xff]  ;;  %v752_v16 = vld [vmem:[%s2523_s2 + $0x1a8] sm:$0xff]  ;;  %v768_v17 = vpack.c.bf16 %v728_v13, %v727_v12  ;;  %v725_v18 = vld [vmem:[%s2523_s2 + $0xd0] sm:$0xff]  ;;  %v349_v62 = vsub.s32 0, %v1547_v25 }
  0x10   :  { %878 = vmatpush1.bf16.msra.mxu0 %v758_v24  ;;  %1443 = vmatprep.mubr.msk.bf16.mxu1 %vm782_vm0, %v590_v59  ;;  %v869_v14 = vsel %vm867_vm1, %v781_v10, 0  ;;  %v726_v19 = vld [vmem:[%s2523_s2 + $0xd8] sm:$0xff]  ;;  %v780_v21 = vpack.c.bf16 %v752_v16, %v751_v15  ;;  %v749_v22 = vld [vmem:[%s2523_s2 + $0x190] sm:$0xff]  ;;  %v20_v24 = vld [vmem:[%s2524_s0 + $0x28] sm:$0xff]  ;;  %v126_v8 = vunpack.c.l.bf16 %v1602_v46 }
  0x11   :  { %879 = vmatprep.subr.bf16.mxu0 %v1472_v0  ;;  %1134 = vmatpush1.bf16.msra.mxu1 %v774_v28  ;;  %v750_v23 = vld [vmem:[%s2523_s2 + $0x198] sm:$0xff]  ;;  %v767_v27 = vpack.c.bf16 %v726_v19, %v725_v18  ;;  %v723_v28 = vld [vmem:[%s2523_s2 + $0xc0] sm:$0xff]  ;;  %v724_v29 = vld [vmem:[%s2523_s2 + $0xc8] sm:$0xff]  ;;  %v137_v34 = vunpack.c.h.bf16 %v20_v24  ;;  %v136_v56 = vunpack.c.l.bf16 %v20_v24  ;;  %v1759_v10 = vrot.slane %v1591_v40, %v349_v62 }
  0x12   :  { %1135 = vmatprep.subr.bf16.mxu1 %v1472_v0  ;;  %903 = vmatprep.mubr.bf16.mxu0 %v588_v4  ;;  %v22_v26 = vld [vmem:[%s2524_s0 + $0x38] sm:$0xff]  ;;  %v779_v33 = vpack.c.bf16 %v750_v23, %v749_v22  ;;  %v747_v36 = vld [vmem:[%s2523_s2 + $0x180] sm:$0xff]  ;;  %v748_v38 = vld [vmem:[%s2523_s2 + $0x188] sm:$0xff]  ;;  %v766_v37 = vpack.c.bf16 %v724_v29, %v723_v28 }
  0x13   :  { %v722_v41 = vld [vmem:[%s2523_s2 + $0xb8] sm:$0xff]  ;;  %v778_v44 = vpack.c.bf16 %v748_v38, %v747_v36  ;;  %v378_v48 = vmul.f32 %v1597_v45, %v137_v34  ;;  %v24_v50 = vld [vmem:[%s2524_s0 + $0x48] sm:$0xff]  ;;  %v719_v53 = vld [vmem:[%s2523_s2 + $0xa0] sm:$0xff]  ;;  %v377_v3 = vmul.f32 %v1703_v32, %v136_v56 }
  0x14   :  { %880 = vmatpush1.bf16.msra.mxu0 %v757_v31  ;;  %v132_v31 = vunpack.c.l.bf16 %v1586_v39  ;;  %v721_v39 = vld [vmem:[%s2523_s2 + $0xb0] sm:$0xff]  ;;  %v720_v54 = vld [vmem:[%s2523_s2 + $0xa8] sm:$0xff]  ;;  %v145_v60 = vunpack.c.h.bf16 %v24_v50  ;;  %v718_v2 = vld [vmem:[%s2523_s2 + $0x98] sm:$0xff]  ;;  %v144_v16 = vunpack.c.l.bf16 %v24_v50 }
  0x15   :  { %881 = vmatprep.subr.bf16.mxu0 %v1472_v0  ;;  %1136 = vmatpush1.bf16.msra.mxu1 %v773_v35  ;;  %v141_v35 = vunpack.c.h.bf16 %v22_v26  ;;  %v765_v52 = vpack.c.bf16 %v722_v41, %v721_v39  ;;  %v764_v63 = vpack.c.bf16 %v720_v54, %v719_v53  ;;  %v19_v25 = vld [vmem:[%s2524_s0 + $0x20] sm:$0xff]  ;;  %v30_v12 = vld [vmem:[%s2524_s0 + $0x78] sm:$0xff]  ;;  %v716_v40 = vld [vmem:[%s2523_s2 + $0x88] sm:$0xff] }
  0x16   :  { %1137 = vmatprep.subr.bf16.mxu1 %v1472_v0  ;;  %v386_v6 = vmul.f32 %v1597_v45, %v145_v60  ;;  %v715_v46 = vld [vmem:[%s2523_s2 + $0x80] sm:$0xff]  ;;  %v157_v20 = vunpack.c.h.bf16 %v30_v12  ;;  %v25_v30 = vld [vmem:[%s2524_s0 + $0x50] sm:$0xff]  ;;  %v134_v34 = vunpack.c.l.bf16 %v19_v25  ;;  %v32_v36 = vld [vmem:[%s2524_s0 + $0x88] sm:$0xff] }
  0x17   :  { %v382_v49 = vmul.f32 %v1597_v45, %v141_v35  ;;  %v762_v23 = vpack.c.bf16 %v716_v40, %v715_v46  ;;  %v23_v29 = vld [vmem:[%s2524_s0 + $0x40] sm:$0xff]  ;;  %v34_v38 = vld [vmem:[%s2524_s0 + $0x98] sm:$0xff]  ;;  %v147_v41 = vunpack.c.h.bf16 %v25_v30 }
  0x18   :  { %882 = vmatpush1.bf16.msra.mxu0 %v756_v43  ;;  %v373_v43 = vmul.f32 %v1703_v32, %v132_v31  ;;  %v143_v39 = vunpack.c.h.bf16 %v23_v29  ;;  %v165_v50 = vunpack.c.h.bf16 %v34_v38 }
  0x19   :  { %883 = vmatprep.subr.bf16.mxu0 %v1472_v0  ;;  %1138 = vmatpush1.bf16.msra.mxu1 %v772_v51  ;;  %v26_v51 = vld [vmem:[%s2524_s0 + $0x58] sm:$0xff]  ;;  %v594_v59 = vpack.c.bf16 %v382_v49, %v378_v48  ;;  %v161_v49 = vunpack.c.h.bf16 %v32_v36  ;;  %v388_v54 = vmul.f32 %v1628_v57, %v147_v41 }
  0x1a   :  { %1139 = vmatprep.subr.bf16.mxu1 %v1472_v0  ;;  %v589_v55 = vpack.c.bf16 %v373_v43, %v369_v42  ;;  %v149_v61 = vunpack.c.h.bf16 %v26_v51  ;;  %v384_v53 = vmul.f32 %v1628_v57, %v143_v39 }
  0x1b   :  { %v402_v60 = vmul.f32 %v1597_v45, %v161_v49 }
  0x1c   :  { %884 = vmatpush1.bf16.msra.mxu0 %v755_v58  ;;  %v140_v58 = vunpack.c.l.bf16 %v22_v26  ;;  %v390_v7 = vmul.f32 %v1597_v45, %v149_v61  ;;  %v406_v61 = vmul.f32 %v1597_v45, %v165_v50 }
  0x1d   :  { %885 = vmatprep.subr.bf16.mxu0 %v1472_v0  ;;  %1140 = vmatpush1.bf16.msra.mxu1 %v771_v1  ;;  %v717_v1 = vld [vmem:[%s2523_s2 + $0x90] sm:$0xff] }
  0x1e   :  { %1141 = vmatprep.subr.bf16.mxu1 %v1472_v0  ;;  %v381_v4 = vmul.f32 %v1703_v32, %v140_v58  ;;  %v763_v13 = vpack.c.bf16 %v718_v2, %v717_v1  ;;  %v598_v18 = vpack.c.bf16 %v390_v7, %v386_v6  ;;  %v27_v58 = vld [vmem:[%s2524_s0 + $0x60] sm:$0xff]  ;;  %v146_v1 = vunpack.c.l.bf16 %v25_v30  ;;  %v36_v2 = vld [vmem:[%s2524_s0 + $0xa8] sm:$0xff] }
  0x1f   :  { %v160_v7 = vunpack.c.l.bf16 %v32_v36  ;;  %v168_v30 = vunpack.c.l.bf16 %v36_v2 }
  0x20   :  { %886 = vmatpush1.bf16.msra.mxu0 %v754_v5  ;;  %v21_v5 = vld [vmem:[%s2524_s0 + $0x30] sm:$0xff] }
  0x21   :  { %887 = vmatprep.subr.bf16.mxu0 %v1472_v0  ;;  %1142 = vmatpush1.bf16.msra.mxu1 %v770_v9  ;;  %v130_v9 = vunpack.c.l.bf16 %v1607_v47  ;;  %v139_v15 = vunpack.c.h.bf16 %v21_v5  ;;  %v593_v47 = vpack.c.bf16 %v381_v4, %v377_v3  ;;  %v138_v35 = vunpack.c.l.bf16 %v21_v5  ;;  %v38_v3 = vld [vmem:[%s2524_s0 + $0xb8] sm:$0xff] }
  0x22   :  { %1151 = vmatprep.subr.bf16.mxu1 %v1472_v0  ;;  %v596_v4 = vpack.c.bf16 %v388_v54, %v384_v53  ;;  %v401_v40 = vmul.f32 %v1703_v32, %v160_v7  ;;  %v409_v39 = vmul.f32 %v1703_v32, %v168_v30  ;;  %v46_v53 = vld [vmem:[%s2524_s0 + $0xf8] sm:$0xff]  ;;  %v41_v7 = vld [vmem:[%s2524_s0 + $0xd0] sm:$0xff] }
  0x23   :  { %v371_v22 = vmul.f32 %v1759_v10, %v130_v9  ;;  %v380_v26 = vmul.f32 %v1628_v57, %v139_v15  ;;  %v606_v9 = vpack.c.bf16 %v406_v61, %v402_v60  ;;  %v45_v30 = vld [vmem:[%s2524_s0 + $0xf0] sm:$0xff] }
  0x24   :  { %888 = vmatpush2.bf16.msra.mxu0 %v769_v11  ;;  %v28_v11 = vld [vmem:[%s2524_s0 + $0x68] sm:$0xff] }
  0x25   :  { %889 = vmatprep.subr.bf16.mxu0 %v1472_v0  ;;  %1152 = vmatpush2.bf16.msra.mxu1 %v869_v14  ;;  %v135_v14 = vunpack.c.h.bf16 %v19_v25  ;;  %v153_v19 = vunpack.c.h.bf16 %v28_v11  ;;  %v152_v43 = vunpack.c.l.bf16 %v28_v11  ;;  %v151_v25 = vunpack.c.h.bf16 %v27_v58 }
  0x26   :  { %1153 = vmatprep.subr.bf16.mxu1 %v1472_v0  ;;  %v169_v11 = vunpack.c.h.bf16 %v36_v2 }
  0x27   :  { %v376_v24 = vmul.f32 %v1628_v57, %v135_v14  ;;  %v394_v31 = vmul.f32 %v1597_v45, %v153_v19  ;;  %v387_v14 = vmul.f32 %v1759_v10, %v146_v1  ;;  %v392_v15 = vmul.f32 %v1628_v57, %v151_v25 }
  0x28   :  { %890 = vmatpush2.bf16.msra.mxu0 %v768_v17  ;;  %v148_v17 = vunpack.c.l.bf16 %v26_v51  ;;  %v375_v51 = vmul.f32 %v1759_v10, %v134_v34 }
  0x29   :  { %891 = vmatprep.subr.bf16.mxu0 %v1472_v0  ;;  %1154 = vmatpush2.bf16.msra.mxu1 %v780_v21  ;;  %v367_v21 = vmul.f32 %v1759_v10, %v126_v8  ;;  %v164_v8 = vunpack.c.l.bf16 %v34_v38 }
  0x2a   :  { %1155 = vmatprep.subr.bf16.mxu1 %v1472_v0  ;;  %v389_v28 = vmul.f32 %v1703_v32, %v148_v17  ;;  %v33_v17 = vld [vmem:[%s2524_s0 + $0x90] sm:$0xff] }
  0x2c   :  { %892 = vmatpush2.bf16.msra.mxu0 %v767_v27  ;;  %v385_v27 = vmul.f32 %v1703_v32, %v144_v16  ;;  %v31_v16 = vld [vmem:[%s2524_s0 + $0x80] sm:$0xff] }
  0x2d   :  { %893 = vmatprep.subr.bf16.mxu0 %v1472_v0  ;;  %1156 = vmatpush2.bf16.msra.mxu1 %v779_v33  ;;  %v398_v33 = vmul.f32 %v1597_v45, %v157_v20  ;;  %v158_v50 = vunpack.c.l.bf16 %v31_v16 }
  0x2e   :  { %1157 = vmatprep.subr.bf16.mxu1 %v1472_v0  ;;  %v597_v42 = vpack.c.bf16 %v389_v28, %v385_v27  ;;  %v159_v27 = vunpack.c.h.bf16 %v31_v16  ;;  %v163_v28 = vunpack.c.h.bf16 %v33_v17 }
  0x2f   :  { %v602_v48 = vpack.c.bf16 %v398_v33, %v394_v31  ;;  %v172_v31 = vunpack.c.l.bf16 %v38_v3  ;;  %v399_v1 = vmul.f32 %v1759_v10, %v158_v50 }
  0x30   :  { %894 = vmatpush2.bf16.msra.mxu0 %v766_v37  ;;  %v592_v37 = vpack.c.bf16 %v380_v26, %v376_v24  ;;  %v42_v24 = vld [vmem:[%s2524_s0 + $0xd8] sm:$0xff]  ;;  %v400_v38 = vmul.f32 %v1628_v57, %v159_v27 }
  0x31   :  { %895 = vmatprep.subr.bf16.mxu0 %v1472_v0  ;;  %1158 = vmatpush2.bf16.msra.mxu1 %v778_v44  ;;  %v156_v44 = vunpack.c.l.bf16 %v30_v12  ;;  %v173_v12 = vunpack.c.h.bf16 %v38_v3  ;;  %v181_v34 = vunpack.c.h.bf16 %v42_v24  ;;  %v413_v41 = vmul.f32 %v1703_v32, %v172_v31 }
  0x32   :  { %v180_v60 = vunpack.c.l.bf16 %v42_v24 }
  0x33   :  { %v397_v56 = vmul.f32 %v1703_v32, %v156_v44  ;;  %v414_v19 = vmul.f32 %v1597_v45, %v173_v12 }
  0x34   :  { %896 = vmatpush2.bf16.msra.mxu0 %v765_v52  ;;  %1160 = vmatmul.mubr.bf16.vlgmr.msra.gmra.mxu1 %v589_v55  ;;  %v379_v52 = vmul.f32 %v1759_v10, %v138_v35  ;;  %v393_v55 = vmul.f32 %v1703_v32, %v152_v43  ;;  %v37_v43 = vld [vmem:[%s2524_s0 + $0xb0] sm:$0xff] }
  0x35   :  { %897 = vmatprep.subr.bf16.mxu0 %v1472_v0  ;;  %1444 = vmatprep.mubr.msk.bf16.mxu1 %vm782_vm0, %v594_v59  ;;  %v29_v59 = vld [vmem:[%s2524_s0 + $0x70] sm:$0xff] }
  0x36   :  { %v591_v62 = vpack.c.bf16 %v379_v52, %v375_v51  ;;  %v155_v5 = vunpack.c.h.bf16 %v29_v59  ;;  %v601_v6 = vpack.c.bf16 %v397_v56, %v393_v55  ;;  %v162_v51 = vunpack.c.l.bf16 %v33_v17  ;;  %v44_v52 = vld [vmem:[%s2524_s0 + $0xe8] sm:$0xff] }
  0x37   :  { %v171_v56 = vunpack.c.h.bf16 %v37_v43  ;;  %v184_v17 = vunpack.c.l.bf16 %v44_v52 }
  0x38   :  { %898 = vmatpush2.bf16.msra.mxu0 %v764_v63  ;;  %v142_v63 = vunpack.c.l.bf16 %v23_v29  ;;  %v396_v46 = vmul.f32 %v1628_v57, %v155_v5  ;;  %v403_v2 = vmul.f32 %v1759_v10, %v162_v51  ;;  %v421_v5 = vmul.f32 %v1703_v32, %v180_v60 }
  0x39   :  { %899 = vmatprep.subr.bf16.mxu0 %v1472_v0  ;;  %v425_v27 = vmul.f32 %v1703_v32, %v184_v17  ;;  %v53_v17 = vld [vmem:[%s2524_s0 + $0x130] sm:$0xff] }
  0x3a   :  { %v600_v26 = vpack.c.bf16 %v396_v46, %v392_v15  ;;  %v50_v15 = vld [vmem:[%s2524_s0 + $0x118] sm:$0xff] }
  0x3c   :  { %900 = vmatpush2.bf16.msra.mxu0 %v763_v13  ;;  %1168 = vmatmul.mubr.bf16.gmra.mxu1 %v593_v47  ;;  %v383_v13 = vmul.f32 %v1759_v10, %v142_v63  ;;  %v405_v47 = vmul.f32 %v1703_v32, %v164_v8  ;;  %v189_v63 = vunpack.c.h.bf16 %v46_v53 }
  0x3d   :  { %901 = vmatprep.subr.bf16.mxu0 %v1472_v0  ;;  %1445 = vmatprep.mubr.msk.bf16.mxu1 %vm782_vm0, %v598_v18  ;;  %v587_v0 = vpack.c.bf16 %v371_v22, %v367_v21  ;;  %v410_v18 = vmul.f32 %v1597_v45, %v169_v11  ;;  %v150_v21 = vunpack.c.l.bf16 %v27_v58  ;;  %v154_v22 = vunpack.c.l.bf16 %v29_v59 }
  0x3e   :  { %v595_v20 = vpack.c.bf16 %v387_v14, %v383_v13  ;;  %v605_v29 = vpack.c.bf16 %v405_v47, %v401_v40  ;;  %v609_v58 = vpack.c.bf16 %v413_v41, %v409_v39  ;;  %v603_v11 = vpack.c.bf16 %v403_v2, %v399_v1  ;;  %v48_v14 = vld [vmem:[%s2524_s0 + $0x108] sm:$0xff] }
  0x3f   :  { %v610_v33 = vpack.c.bf16 %v414_v19, %v410_v18  ;;  %v391_v35 = vmul.f32 %v1759_v10, %v150_v21  ;;  %v395_v36 = vmul.f32 %v1759_v10, %v154_v22  ;;  %v170_v13 = vunpack.c.l.bf16 %v37_v43  ;;  %v56_v2 = vld [vmem:[%s2524_s0 + $0x148] sm:$0xff] }
  0x40   :  { %902 = vmatpush2.bf16.msra.mxu0 %v762_v23  ;;  %v40_v23 = vld [vmem:[%s2524_s0 + $0xc8] sm:$0xff]  ;;  %v179_v47 = vunpack.c.h.bf16 %v41_v7  ;;  %v188_v18 = vunpack.c.l.bf16 %v46_v53  ;;  %v197_v21 = vunpack.c.h.bf16 %v50_v15  ;;  %v187_v41 = vunpack.c.h.bf16 %v45_v30 }
  0x41   :  { %v599_v49 = vpack.c.bf16 %v395_v36, %v391_v35  ;;  %v176_v59 = vunpack.c.l.bf16 %v40_v23  ;;  %v178_v35 = vunpack.c.l.bf16 %v41_v7  ;;  %v52_v36 = vld [vmem:[%s2524_s0 + $0x128] sm:$0xff]  ;;  %v192_v43 = vunpack.c.l.bf16 %v48_v14 }
  0x42   :  { %v186_v1 = vunpack.c.l.bf16 %v45_v30  ;;  %v200_v7 = vunpack.c.l.bf16 %v52_v36  ;;  %v208_v30 = vunpack.c.l.bf16 %v56_v2 }
  0x43   :  { %904 = vmatmul.mubr.bf16.vlgmr.msra.gmra.mxu0 %v587_v0  ;;  %v177_v0 = vunpack.c.h.bf16 %v40_v23  ;;  %v417_v25 = vmul.f32 %v1703_v32, %v176_v59  ;;  %v411_v23 = vmul.f32 %v1759_v10, %v170_v13  ;;  %v49_v59 = vld [vmem:[%s2524_s0 + $0x110] sm:$0xff] }
  0x44   :  { %911 = vmatprep.mubr.bf16.mxu0 %v592_v37  ;;  %1176 = vmatmul.mubr.bf16.gmra.mxu1 %v597_v42  ;;  %v404_v37 = vmul.f32 %v1628_v57, %v163_v28  ;;  %v35_v42 = vld [vmem:[%s2524_s0 + $0xa0] sm:$0xff]  ;;  %v429_v28 = vmul.f32 %v1703_v32, %v188_v18 }
  0x45   :  { %1446 = vmatprep.mubr.msk.bf16.mxu1 %vm782_vm0, %v602_v48  ;;  %v418_v44 = vmul.f32 %v1597_v45, %v177_v0  ;;  %v422_v48 = vmul.f32 %v1597_v45, %v181_v34  ;;  %v167_v55 = vunpack.c.h.bf16 %v35_v42  ;;  %v166_v12 = vunpack.c.l.bf16 %v35_v42 }
  0x46   :  { %v604_v54 = vpack.c.bf16 %v404_v37, %v400_v38  ;;  %v613_v16 = vpack.c.bf16 %v421_v5, %v417_v25  ;;  %v54_v38 = vld [vmem:[%s2524_s0 + $0x138] sm:$0xff]  ;;  %v617_v42 = vpack.c.bf16 %v429_v28, %v425_v27  ;;  %v195_v5 = vunpack.c.h.bf16 %v49_v59 }
  0x47   :  { %v614_v61 = vpack.c.bf16 %v422_v48, %v418_v44  ;;  %v408_v3 = vmul.f32 %v1628_v57, %v167_v55  ;;  %v407_v22 = vmul.f32 %v1759_v10, %v166_v12  ;;  %v196_v44 = vunpack.c.l.bf16 %v50_v15 }
  0x48   :  { %v205_v50 = vunpack.c.h.bf16 %v54_v38  ;;  %v433_v55 = vmul.f32 %v1703_v32, %v192_v43  ;;  %v203_v28 = vunpack.c.h.bf16 %v53_v17  ;;  %v57_v43 = vld [vmem:[%s2524_s0 + $0x150] sm:$0xff] }
  0x49   :  { %v607_v0 = vpack.c.bf16 %v411_v23, %v407_v22  ;;  %v194_v22 = vunpack.c.l.bf16 %v49_v59  ;;  %v60_v23 = vld [vmem:[%s2524_s0 + $0x168] sm:$0xff] }
  0x4a   :  { %v216_v59 = vunpack.c.l.bf16 %v60_v23 }
  0x4b   :  { %912 = vmatmul.mubr.bf16.gmra.mxu0 %v591_v62  ;;  %v185_v62 = vunpack.c.h.bf16 %v44_v52  ;;  %v419_v52 = vmul.f32 %v1759_v10, %v178_v35 }
  0x4c   :  { %919 = vmatprep.mubr.bf16.mxu0 %v596_v4  ;;  %1184 = vmatmul.mubr.bf16.gmra.mxu1 %v601_v6  ;;  %v412_v4 = vmul.f32 %v1628_v57, %v171_v56  ;;  %v39_v6 = vld [vmem:[%s2524_s0 + $0xc0] sm:$0xff]  ;;  %v437_v56 = vmul.f32 %v1703_v32, %v196_v44 }
  0x4d   :  { %1447 = vmatprep.mubr.msk.bf16.mxu1 %vm782_vm0, %v606_v9  ;;  %v426_v8 = vmul.f32 %v1597_v45, %v185_v62  ;;  %v430_v9 = vmul.f32 %v1597_v45, %v189_v63  ;;  %v175_v40 = vunpack.c.h.bf16 %v39_v6  ;;  %v174_v34 = vunpack.c.l.bf16 %v39_v6 }
  0x4e   :  { %v608_v46 = vpack.c.bf16 %v412_v4, %v408_v3  ;;  %v58_v3 = vld [vmem:[%s2524_s0 + $0x158] sm:$0xff]  ;;  %v621_v6 = vpack.c.bf16 %v437_v56, %v433_v55  ;;  %v211_v56 = vunpack.c.h.bf16 %v57_v43 }
  0x4f   :  { %v618_v19 = vpack.c.bf16 %v430_v9, %v426_v8  ;;  %v416_v24 = vmul.f32 %v1628_v57, %v175_v40  ;;  %v415_v51 = vmul.f32 %v1759_v10, %v174_v34  ;;  %v204_v8 = vunpack.c.l.bf16 %v54_v38 }
  0x50   :  { %v213_v12 = vunpack.c.h.bf16 %v58_v3  ;;  %v441_v40 = vmul.f32 %v1703_v32, %v200_v7  ;;  %v61_v7 = vld [vmem:[%s2524_s0 + $0x170] sm:$0xff] }
  0x51   :  { %v611_v62 = vpack.c.bf16 %v419_v52, %v415_v51  ;;  %v202_v51 = vunpack.c.l.bf16 %v53_v17  ;;  %v64_v52 = vld [vmem:[%s2524_s0 + $0x188] sm:$0xff] }
  0x52   :  { %v224_v17 = vunpack.c.l.bf16 %v64_v52 }
  0x53   :  { %920 = vmatmul.mubr.bf16.gmra.mxu0 %v595_v20  ;;  %v193_v20 = vunpack.c.h.bf16 %v48_v14  ;;  %v427_v14 = vmul.f32 %v1759_v10, %v186_v1 }
  0x54   :  { %927 = vmatprep.mubr.bf16.mxu0 %v600_v26  ;;  %1192 = vmatmul.mubr.bf16.gmra.mxu1 %v605_v29  ;;  %v420_v26 = vmul.f32 %v1628_v57, %v179_v47  ;;  %v43_v29 = vld [vmem:[%s2524_s0 + $0xe0] sm:$0xff]  ;;  %v445_v47 = vmul.f32 %v1703_v32, %v204_v8 }
  0x55   :  { %1448 = vmatprep.mubr.msk.bf16.mxu1 %vm782_vm0, %v610_v33  ;;  %v434_v31 = vmul.f32 %v1597_v45, %v193_v20  ;;  %v438_v33 = vmul.f32 %v1597_v45, %v197_v21  ;;  %v183_v39 = vunpack.c.h.bf16 %v43_v29  ;;  %v182_v63 = vunpack.c.l.bf16 %v43_v29 }
  0x56   :  { %v612_v37 = vpack.c.bf16 %v420_v26, %v416_v24  ;;  %v62_v24 = vld [vmem:[%s2524_s0 + $0x178] sm:$0xff]  ;;  %v625_v29 = vpack.c.bf16 %v445_v47, %v441_v40  ;;  %v219_v47 = vunpack.c.h.bf16 %v61_v7 }
  0x57   :  { %v622_v48 = vpack.c.bf16 %v438_v33, %v434_v31  ;;  %v424_v53 = vmul.f32 %v1628_v57, %v183_v39  ;;  %v423_v13 = vmul.f32 %v1759_v10, %v182_v63  ;;  %v212_v31 = vunpack.c.l.bf16 %v58_v3 }
  0x58   :  { %v221_v34 = vunpack.c.h.bf16 %v62_v24  ;;  %v449_v39 = vmul.f32 %v1703_v32, %v208_v30  ;;  %v65_v30 = vld [vmem:[%s2524_s0 + $0x190] sm:$0xff] }
  0x59   :  { %v615_v20 = vpack.c.bf16 %v427_v14, %v423_v13  ;;  %v210_v13 = vunpack.c.l.bf16 %v57_v43  ;;  %v68_v14 = vld [vmem:[%s2524_s0 + $0x1a8] sm:$0xff] }
  0x5a   :  { %v232_v43 = vunpack.c.l.bf16 %v68_v14 }
  0x5b   :  { %928 = vmatmul.mubr.bf16.gmra.mxu0 %v599_v49  ;;  %v201_v49 = vunpack.c.h.bf16 %v52_v36  ;;  %v435_v36 = vmul.f32 %v1759_v10, %v194_v22 }
  0x5c   :  { %935 = vmatprep.mubr.bf16.mxu0 %v604_v54  ;;  %1200 = vmatmul.mubr.bf16.gmra.mxu1 %v609_v58  ;;  %v428_v54 = vmul.f32 %v1628_v57, %v187_v41  ;;  %v47_v58 = vld [vmem:[%s2524_s0 + $0x100] sm:$0xff]  ;;  %v453_v41 = vmul.f32 %v1703_v32, %v212_v31 }
  0x5d   :  { %1449 = vmatprep.mubr.msk.bf16.mxu1 %vm782_vm0, %v614_v61  ;;  %v442_v60 = vmul.f32 %v1597_v45, %v201_v49  ;;  %v446_v61 = vmul.f32 %v1597_v45, %v205_v50  ;;  %v191_v25 = vunpack.c.h.bf16 %v47_v58  ;;  %v190_v21 = vunpack.c.l.bf16 %v47_v58 }
  0x5e   :  { %v616_v4 = vpack.c.bf16 %v428_v54, %v424_v53  ;;  %v66_v53 = vld [vmem:[%s2524_s0 + $0x198] sm:$0xff]  ;;  %v629_v58 = vpack.c.bf16 %v453_v41, %v449_v39  ;;  %v227_v41 = vunpack.c.h.bf16 %v65_v30 }
  0x5f   :  { %v626_v9 = vpack.c.bf16 %v446_v61, %v442_v60  ;;  %v432_v15 = vmul.f32 %v1628_v57, %v191_v25  ;;  %v431_v35 = vmul.f32 %v1759_v10, %v190_v21  ;;  %v220_v60 = vunpack.c.l.bf16 %v62_v24 }
  0x60   :  { %v229_v63 = vunpack.c.h.bf16 %v66_v53  ;;  %v457_v25 = vmul.f32 %v1703_v32, %v216_v59  ;;  %v69_v59 = vld [vmem:[%s2524_s0 + $0x1b0] sm:$0xff] }
  0x61   :  { %v619_v49 = vpack.c.bf16 %v435_v36, %v431_v35  ;;  %v218_v35 = vunpack.c.l.bf16 %v61_v7  ;;  %v72_v36 = vld [vmem:[%s2524_s0 + $0x1c8] sm:$0xff] }
  0x62   :  { %v240_v7 = vunpack.c.l.bf16 %v72_v36 }
  0x63   :  { %936 = vmatmul.mubr.bf16.gmra.mxu0 %v603_v11  ;;  %v209_v11 = vunpack.c.h.bf16 %v56_v2  ;;  %v443_v2 = vmul.f32 %v1759_v10, %v202_v51 }
  0x64   :  { %943 = vmatprep.mubr.bf16.mxu0 %v608_v46  ;;  %1208 = vmatmul.mubr.bf16.gmra.mxu1 %v613_v16  ;;  %v436_v46 = vmul.f32 %v1628_v57, %v195_v5  ;;  %v51_v16 = vld [vmem:[%s2524_s0 + $0x120] sm:$0xff]  ;;  %v461_v5 = vmul.f32 %v1703_v32, %v220_v60 }
  0x65   :  { %1450 = vmatprep.mubr.msk.bf16.mxu1 %vm782_vm0, %v618_v19  ;;  %v450_v18 = vmul.f32 %v1597_v45, %v209_v11  ;;  %v454_v19 = vmul.f32 %v1597_v45, %v213_v12  ;;  %v199_v27 = vunpack.c.h.bf16 %v51_v16  ;;  %v198_v50 = vunpack.c.l.bf16 %v51_v16 }
  0x66   :  { %v620_v26 = vpack.c.bf16 %v436_v46, %v432_v15  ;;  %v70_v15 = vld [vmem:[%s2524_s0 + $0x1b8] sm:$0xff]  ;;  %v633_v16 = vpack.c.bf16 %v461_v5, %v457_v25  ;;  %v235_v5 = vunpack.c.h.bf16 %v69_v59 }
  0x67   :  { %v630_v33 = vpack.c.bf16 %v454_v19, %v450_v18  ;;  %v440_v38 = vmul.f32 %v1628_v57, %v199_v27  ;;  %v439_v1 = vmul.f32 %v1759_v10, %v198_v50  ;;  %v228_v18 = vunpack.c.l.bf16 %v66_v53 }
  0x68   :  { %v237_v21 = vunpack.c.h.bf16 %v70_v15  ;;  %v465_v27 = vmul.f32 %v1703_v32, %v224_v17  ;;  %v73_v17 = vld [vmem:[%s2524_s0 + $0x1d0] sm:$0xff] }
  0x69   :  { %v623_v11 = vpack.c.bf16 %v443_v2, %v439_v1  ;;  %v226_v1 = vunpack.c.l.bf16 %v65_v30  ;;  %v76_v2 = vld [vmem:[%s2524_s0 + $0x1e8] sm:$0xff] }
  0x6a   :  { %v248_v30 = vunpack.c.l.bf16 %v76_v2 }
  0x6b   :  { %944 = vmatmul.mubr.bf16.gmra.mxu0 %v607_v0  ;;  %v217_v0 = vunpack.c.h.bf16 %v60_v23  ;;  %v451_v23 = vmul.f32 %v1759_v10, %v210_v13 }
  0x6c   :  { %951 = vmatprep.mubr.bf16.mxu0 %v612_v37  ;;  %1216 = vmatmul.mubr.bf16.gmra.mxu1 %v617_v42  ;;  %v444_v37 = vmul.f32 %v1628_v57, %v203_v28  ;;  %v55_v42 = vld [vmem:[%s2524_s0 + $0x140] sm:$0xff]  ;;  %v469_v28 = vmul.f32 %v1703_v32, %v228_v18 }
  0x6d   :  { %1451 = vmatprep.mubr.msk.bf16.mxu1 %vm782_vm0, %v622_v48  ;;  %v458_v44 = vmul.f32 %v1597_v45, %v217_v0  ;;  %v462_v48 = vmul.f32 %v1597_v45, %v221_v34  ;;  %v207_v55 = vunpack.c.h.bf16 %v55_v42  ;;  %v206_v12 = vunpack.c.l.bf16 %v55_v42 }
  0x6e   :  { %v624_v54 = vpack.c.bf16 %v444_v37, %v440_v38  ;;  %v74_v38 = vld [vmem:[%s2524_s0 + $0x1d8] sm:$0xff]  ;;  %v637_v42 = vpack.c.bf16 %v469_v28, %v465_v27  ;;  %v243_v28 = vunpack.c.h.bf16 %v73_v17 }
  0x6f   :  { %v634_v61 = vpack.c.bf16 %v462_v48, %v458_v44  ;;  %v448_v3 = vmul.f32 %v1628_v57, %v207_v55  ;;  %v447_v22 = vmul.f32 %v1759_v10, %v206_v12  ;;  %v236_v44 = vunpack.c.l.bf16 %v70_v15 }
  0x70   :  { %v245_v50 = vunpack.c.h.bf16 %v74_v38  ;;  %v473_v55 = vmul.f32 %v1703_v32, %v232_v43  ;;  %v77_v43 = vld [vmem:[%s2524_s0 + $0x1f0] sm:$0xff] }
  0x71   :  { %v627_v0 = vpack.c.bf16 %v451_v23, %v447_v22  ;;  %v234_v22 = vunpack.c.l.bf16 %v69_v59  ;;  %v80_v23 = vld [vmem:[%s2524_s0 + $0x208] sm:$0xff] }
  0x72   :  { %v256_v59 = vunpack.c.l.bf16 %v80_v23 }
  0x73   :  { %952 = vmatmul.mubr.bf16.gmra.mxu0 %v611_v62  ;;  %v225_v62 = vunpack.c.h.bf16 %v64_v52  ;;  %v459_v52 = vmul.f32 %v1759_v10, %v218_v35 }
  0x74   :  { %959 = vmatprep.mubr.bf16.mxu0 %v616_v4  ;;  %1224 = vmatmul.mubr.bf16.gmra.mxu1 %v621_v6  ;;  %v452_v4 = vmul.f32 %v1628_v57, %v211_v56  ;;  %v59_v6 = vld [vmem:[%s2524_s0 + $0x160] sm:$0xff]  ;;  %v477_v56 = vmul.f32 %v1703_v32, %v236_v44 }
  0x75   :  { %1452 = vmatprep.mubr.msk.bf16.mxu1 %vm782_vm0, %v626_v9  ;;  %v466_v8 = vmul.f32 %v1597_v45, %v225_v62  ;;  %v470_v9 = vmul.f32 %v1597_v45, %v229_v63  ;;  %v215_v40 = vunpack.c.h.bf16 %v59_v6  ;;  %v214_v34 = vunpack.c.l.bf16 %v59_v6 }
  0x76   :  { %v628_v46 = vpack.c.bf16 %v452_v4, %v448_v3  ;;  %v78_v3 = vld [vmem:[%s2524_s0 + $0x1f8] sm:$0xff]  ;;  %v641_v6 = vpack.c.bf16 %v477_v56, %v473_v55  ;;  %v251_v56 = vunpack.c.h.bf16 %v77_v43 }
  0x77   :  { %v638_v19 = vpack.c.bf16 %v470_v9, %v466_v8  ;;  %v456_v24 = vmul.f32 %v1628_v57, %v215_v40  ;;  %v455_v51 = vmul.f32 %v1759_v10, %v214_v34  ;;  %v244_v8 = vunpack.c.l.bf16 %v74_v38 }
  0x78   :  { %v253_v12 = vunpack.c.h.bf16 %v78_v3  ;;  %v481_v40 = vmul.f32 %v1703_v32, %v240_v7  ;;  %v81_v7 = vld [vmem:[%s2524_s0 + $0x210] sm:$0xff] }
  0x79   :  { %v631_v62 = vpack.c.bf16 %v459_v52, %v455_v51  ;;  %v242_v51 = vunpack.c.l.bf16 %v73_v17  ;;  %v84_v52 = vld [vmem:[%s2524_s0 + $0x228] sm:$0xff] }
  0x7a   :  { %v264_v17 = vunpack.c.l.bf16 %v84_v52 }
  0x7b   :  { %960 = vmatmul.mubr.bf16.gmra.mxu0 %v615_v20  ;;  %v233_v20 = vunpack.c.h.bf16 %v68_v14  ;;  %v467_v14 = vmul.f32 %v1759_v10, %v226_v1 }
  0x7c   :  { %967 = vmatprep.mubr.bf16.mxu0 %v620_v26  ;;  %1232 = vmatmul.mubr.bf16.gmra.mxu1 %v625_v29  ;;  %v460_v26 = vmul.f32 %v1628_v57, %v219_v47  ;;  %v63_v29 = vld [vmem:[%s2524_s0 + $0x180] sm:$0xff]  ;;  %v485_v47 = vmul.f32 %v1703_v32, %v244_v8 }
  0x7d   :  { %1453 = vmatprep.mubr.msk.bf16.mxu1 %vm782_vm0, %v630_v33  ;;  %v474_v31 = vmul.f32 %v1597_v45, %v233_v20  ;;  %v478_v33 = vmul.f32 %v1597_v45, %v237_v21  ;;  %v223_v39 = vunpack.c.h.bf16 %v63_v29  ;;  %v222_v63 = vunpack.c.l.bf16 %v63_v29 }
  0x7e   :  { %v632_v37 = vpack.c.bf16 %v460_v26, %v456_v24  ;;  %v82_v24 = vld [vmem:[%s2524_s0 + $0x218] sm:$0xff]  ;;  %v645_v29 = vpack.c.bf16 %v485_v47, %v481_v40  ;;  %v259_v47 = vunpack.c.h.bf16 %v81_v7 }
  0x7f   :  { %v642_v48 = vpack.c.bf16 %v478_v33, %v474_v31  ;;  %v464_v53 = vmul.f32 %v1628_v57, %v223_v39  ;;  %v463_v13 = vmul.f32 %v1759_v10, %v222_v63  ;;  %v252_v31 = vunpack.c.l.bf16 %v78_v3 }
  0x80   :  { %v261_v34 = vunpack.c.h.bf16 %v82_v24  ;;  %v489_v39 = vmul.f32 %v1703_v32, %v248_v30  ;;  %v85_v30 = vld [vmem:[%s2524_s0 + $0x230] sm:$0xff] }
  0x81   :  { %v635_v20 = vpack.c.bf16 %v467_v14, %v463_v13  ;;  %v250_v13 = vunpack.c.l.bf16 %v77_v43  ;;  %v88_v14 = vld [vmem:[%s2524_s0 + $0x248] sm:$0xff] }
  0x82   :  { %v272_v43 = vunpack.c.l.bf16 %v88_v14 }
  0x83   :  { %968 = vmatmul.mubr.bf16.gmra.mxu0 %v619_v49  ;;  %v241_v49 = vunpack.c.h.bf16 %v72_v36  ;;  %v475_v36 = vmul.f32 %v1759_v10, %v234_v22 }
  0x84   :  { %975 = vmatprep.mubr.bf16.mxu0 %v624_v54  ;;  %1240 = vmatmul.mubr.bf16.gmra.mxu1 %v629_v58  ;;  %v468_v54 = vmul.f32 %v1628_v57, %v227_v41  ;;  %v67_v58 = vld [vmem:[%s2524_s0 + $0x1a0] sm:$0xff]  ;;  %v493_v41 = vmul.f32 %v1703_v32, %v252_v31 }
  0x85   :  { %1454 = vmatprep.mubr.msk.bf16.mxu1 %vm782_vm0, %v634_v61  ;;  %v482_v60 = vmul.f32 %v1597_v45, %v241_v49  ;;  %v486_v61 = vmul.f32 %v1597_v45, %v245_v50  ;;  %v231_v25 = vunpack.c.h.bf16 %v67_v58  ;;  %v230_v21 = vunpack.c.l.bf16 %v67_v58 }
  0x86   :  { %v636_v4 = vpack.c.bf16 %v468_v54, %v464_v53  ;;  %v86_v53 = vld [vmem:[%s2524_s0 + $0x238] sm:$0xff]  ;;  %v649_v58 = vpack.c.bf16 %v493_v41, %v489_v39  ;;  %v267_v41 = vunpack.c.h.bf16 %v85_v30 }
  0x87   :  { %v646_v9 = vpack.c.bf16 %v486_v61, %v482_v60  ;;  %v472_v15 = vmul.f32 %v1628_v57, %v231_v25  ;;  %v471_v35 = vmul.f32 %v1759_v10, %v230_v21  ;;  %v260_v60 = vunpack.c.l.bf16 %v82_v24 }
  0x88   :  { %v269_v63 = vunpack.c.h.bf16 %v86_v53  ;;  %v497_v25 = vmul.f32 %v1703_v32, %v256_v59  ;;  %v89_v59 = vld [vmem:[%s2524_s0 + $0x250] sm:$0xff] }
  0x89   :  { %v639_v49 = vpack.c.bf16 %v475_v36, %v471_v35  ;;  %v258_v35 = vunpack.c.l.bf16 %v81_v7  ;;  %v92_v36 = vld [vmem:[%s2524_s0 + $0x268] sm:$0xff] }
  0x8a   :  { %v280_v7 = vunpack.c.l.bf16 %v92_v36 }
  0x8b   :  { %976 = vmatmul.mubr.bf16.gmra.mxu0 %v623_v11  ;;  %v249_v11 = vunpack.c.h.bf16 %v76_v2  ;;  %v483_v2 = vmul.f32 %v1759_v10, %v242_v51 }
  0x8c   :  { %983 = vmatprep.mubr.bf16.mxu0 %v628_v46  ;;  %1248 = vmatmul.mubr.bf16.gmra.mxu1 %v633_v16  ;;  %v476_v46 = vmul.f32 %v1628_v57, %v235_v5  ;;  %v71_v16 = vld [vmem:[%s2524_s0 + $0x1c0] sm:$0xff]  ;;  %v501_v5 = vmul.f32 %v1703_v32, %v260_v60 }
  0x8d   :  { %1455 = vmatprep.mubr.msk.bf16.mxu1 %vm782_vm0, %v638_v19  ;;  %v490_v18 = vmul.f32 %v1597_v45, %v249_v11  ;;  %v494_v19 = vmul.f32 %v1597_v45, %v253_v12  ;;  %v239_v27 = vunpack.c.h.bf16 %v71_v16  ;;  %v238_v50 = vunpack.c.l.bf16 %v71_v16 }
  0x8e   :  { %v640_v26 = vpack.c.bf16 %v476_v46, %v472_v15  ;;  %v90_v15 = vld [vmem:[%s2524_s0 + $0x258] sm:$0xff]  ;;  %v653_v16 = vpack.c.bf16 %v501_v5, %v497_v25  ;;  %v275_v5 = vunpack.c.h.bf16 %v89_v59 }
  0x8f   :  { %v650_v33 = vpack.c.bf16 %v494_v19, %v490_v18  ;;  %v480_v38 = vmul.f32 %v1628_v57, %v239_v27  ;;  %v479_v1 = vmul.f32 %v1759_v10, %v238_v50  ;;  %v268_v18 = vunpack.c.l.bf16 %v86_v53 }
  0x90   :  { %v277_v21 = vunpack.c.h.bf16 %v90_v15  ;;  %v505_v27 = vmul.f32 %v1703_v32, %v264_v17  ;;  %v93_v17 = vld [vmem:[%s2524_s0 + $0x270] sm:$0xff] }
  0x91   :  { %v643_v11 = vpack.c.bf16 %v483_v2, %v479_v1  ;;  %v266_v1 = vunpack.c.l.bf16 %v85_v30  ;;  %v96_v2 = vld [vmem:[%s2524_s0 + $0x288] sm:$0xff] }
  0x92   :  { %v288_v30 = vunpack.c.l.bf16 %v96_v2 }
  0x93   :  { %984 = vmatmul.mubr.bf16.gmra.mxu0 %v627_v0  ;;  %v257_v0 = vunpack.c.h.bf16 %v80_v23  ;;  %v491_v23 = vmul.f32 %v1759_v10, %v250_v13 }
  0x94   :  { %991 = vmatprep.mubr.bf16.mxu0 %v632_v37  ;;  %1256 = vmatmul.mubr.bf16.gmra.mxu1 %v637_v42  ;;  %v484_v37 = vmul.f32 %v1628_v57, %v243_v28  ;;  %v75_v42 = vld [vmem:[%s2524_s0 + $0x1e0] sm:$0xff]  ;;  %v509_v28 = vmul.f32 %v1703_v32, %v268_v18 }
  0x95   :  { %1456 = vmatprep.mubr.msk.bf16.mxu1 %vm782_vm0, %v642_v48  ;;  %v498_v44 = vmul.f32 %v1597_v45, %v257_v0  ;;  %v502_v48 = vmul.f32 %v1597_v45, %v261_v34  ;;  %v247_v55 = vunpack.c.h.bf16 %v75_v42  ;;  %v246_v12 = vunpack.c.l.bf16 %v75_v42 }
  0x96   :  { %v644_v54 = vpack.c.bf16 %v484_v37, %v480_v38  ;;  %v94_v38 = vld [vmem:[%s2524_s0 + $0x278] sm:$0xff]  ;;  %v657_v42 = vpack.c.bf16 %v509_v28, %v505_v27  ;;  %v283_v28 = vunpack.c.h.bf16 %v93_v17 }
  0x97   :  { %v654_v61 = vpack.c.bf16 %v502_v48, %v498_v44  ;;  %v488_v3 = vmul.f32 %v1628_v57, %v247_v55  ;;  %v487_v22 = vmul.f32 %v1759_v10, %v246_v12  ;;  %v276_v44 = vunpack.c.l.bf16 %v90_v15 }
  0x98   :  { %v285_v50 = vunpack.c.h.bf16 %v94_v38  ;;  %v513_v55 = vmul.f32 %v1703_v32, %v272_v43  ;;  %v97_v43 = vld [vmem:[%s2524_s0 + $0x290] sm:$0xff] }
  0x99   :  { %v647_v0 = vpack.c.bf16 %v491_v23, %v487_v22  ;;  %v274_v22 = vunpack.c.l.bf16 %v89_v59  ;;  %v100_v23 = vld [vmem:[%s2524_s0 + $0x2a8] sm:$0xff] }
  0x9a   :  { %v296_v59 = vunpack.c.l.bf16 %v100_v23 }
  0x9b   :  { %992 = vmatmul.mubr.bf16.gmra.mxu0 %v631_v62  ;;  %v265_v62 = vunpack.c.h.bf16 %v84_v52  ;;  %v499_v52 = vmul.f32 %v1759_v10, %v258_v35 }
  0x9c   :  { %999 = vmatprep.mubr.bf16.mxu0 %v636_v4  ;;  %1264 = vmatmul.mubr.bf16.gmra.mxu1 %v641_v6  ;;  %v492_v4 = vmul.f32 %v1628_v57, %v251_v56  ;;  %v79_v6 = vld [vmem:[%s2524_s0 + $0x200] sm:$0xff]  ;;  %v517_v56 = vmul.f32 %v1703_v32, %v276_v44 }
  0x9d   :  { %1457 = vmatprep.mubr.msk.bf16.mxu1 %vm782_vm0, %v646_v9  ;;  %v506_v8 = vmul.f32 %v1597_v45, %v265_v62  ;;  %v510_v9 = vmul.f32 %v1597_v45, %v269_v63  ;;  %v255_v40 = vunpack.c.h.bf16 %v79_v6  ;;  %v254_v34 = vunpack.c.l.bf16 %v79_v6 }
  0x9e   :  { %v648_v46 = vpack.c.bf16 %v492_v4, %v488_v3  ;;  %v98_v3 = vld [vmem:[%s2524_s0 + $0x298] sm:$0xff]  ;;  %v661_v6 = vpack.c.bf16 %v517_v56, %v513_v55  ;;  %v291_v56 = vunpack.c.h.bf16 %v97_v43 }
  0x9f   :  { %v658_v19 = vpack.c.bf16 %v510_v9, %v506_v8  ;;  %v496_v24 = vmul.f32 %v1628_v57, %v255_v40  ;;  %v495_v51 = vmul.f32 %v1759_v10, %v254_v34  ;;  %v284_v8 = vunpack.c.l.bf16 %v94_v38 }
  0xa0   :  { %v293_v12 = vunpack.c.h.bf16 %v98_v3  ;;  %v521_v40 = vmul.f32 %v1703_v32, %v280_v7  ;;  %v101_v7 = vld [vmem:[%s2524_s0 + $0x2b0] sm:$0xff] }
  0xa1   :  { %v651_v62 = vpack.c.bf16 %v499_v52, %v495_v51  ;;  %v282_v51 = vunpack.c.l.bf16 %v93_v17  ;;  %v104_v52 = vld [vmem:[%s2524_s0 + $0x2c8] sm:$0xff] }
  0xa2   :  { %v304_v17 = vunpack.c.l.bf16 %v104_v52 }
  0xa3   :  { %1000 = vmatmul.mubr.bf16.gmra.mxu0 %v635_v20  ;;  %v273_v20 = vunpack.c.h.bf16 %v88_v14  ;;  %v507_v14 = vmul.f32 %v1759_v10, %v266_v1 }
  0xa4   :  { %1007 = vmatprep.mubr.bf16.mxu0 %v640_v26  ;;  %1272 = vmatmul.mubr.bf16.gmra.mxu1 %v645_v29  ;;  %v500_v26 = vmul.f32 %v1628_v57, %v259_v47  ;;  %v83_v29 = vld [vmem:[%s2524_s0 + $0x220] sm:$0xff]  ;;  %v525_v47 = vmul.f32 %v1703_v32, %v284_v8 }
  0xa5   :  { %1458 = vmatprep.mubr.msk.bf16.mxu1 %vm782_vm0, %v650_v33  ;;  %v514_v31 = vmul.f32 %v1597_v45, %v273_v20  ;;  %v518_v33 = vmul.f32 %v1597_v45, %v277_v21  ;;  %v263_v39 = vunpack.c.h.bf16 %v83_v29  ;;  %v262_v63 = vunpack.c.l.bf16 %v83_v29 }
  0xa6   :  { %v652_v37 = vpack.c.bf16 %v500_v26, %v496_v24  ;;  %v102_v24 = vld [vmem:[%s2524_s0 + $0x2b8] sm:$0xff]  ;;  %v665_v29 = vpack.c.bf16 %v525_v47, %v521_v40  ;;  %v299_v47 = vunpack.c.h.bf16 %v101_v7 }
  0xa7   :  { %v662_v48 = vpack.c.bf16 %v518_v33, %v514_v31  ;;  %v504_v53 = vmul.f32 %v1628_v57, %v263_v39  ;;  %v503_v13 = vmul.f32 %v1759_v10, %v262_v63  ;;  %v292_v31 = vunpack.c.l.bf16 %v98_v3 }
  0xa8   :  { %v301_v34 = vunpack.c.h.bf16 %v102_v24  ;;  %v529_v39 = vmul.f32 %v1703_v32, %v288_v30  ;;  %v105_v30 = vld [vmem:[%s2524_s0 + $0x2d0] sm:$0xff] }
  0xa9   :  { %v655_v20 = vpack.c.bf16 %v507_v14, %v503_v13  ;;  %v290_v13 = vunpack.c.l.bf16 %v97_v43  ;;  %v108_v14 = vld [vmem:[%s2524_s0 + $0x2e8] sm:$0xff] }
  0xaa   :  { %v312_v43 = vunpack.c.l.bf16 %v108_v14 }
  0xab   :  { %1008 = vmatmul.mubr.bf16.gmra.mxu0 %v639_v49  ;;  %v281_v49 = vunpack.c.h.bf16 %v92_v36  ;;  %v515_v36 = vmul.f32 %v1759_v10, %v274_v22 }
  0xac   :  { %1015 = vmatprep.mubr.bf16.mxu0 %v644_v54  ;;  %1280 = vmatmul.mubr.bf16.gmra.mxu1 %v649_v58  ;;  %v508_v54 = vmul.f32 %v1628_v57, %v267_v41  ;;  %v87_v58 = vld [vmem:[%s2524_s0 + $0x240] sm:$0xff]  ;;  %v533_v41 = vmul.f32 %v1703_v32, %v292_v31 }
  0xad   :  { %1459 = vmatprep.mubr.msk.bf16.mxu1 %vm782_vm0, %v654_v61  ;;  %v522_v60 = vmul.f32 %v1597_v45, %v281_v49  ;;  %v526_v61 = vmul.f32 %v1597_v45, %v285_v50  ;;  %v271_v25 = vunpack.c.h.bf16 %v87_v58  ;;  %v270_v21 = vunpack.c.l.bf16 %v87_v58 }
  0xae   :  { %v656_v4 = vpack.c.bf16 %v508_v54, %v504_v53  ;;  %v106_v53 = vld [vmem:[%s2524_s0 + $0x2d8] sm:$0xff]  ;;  %v669_v58 = vpack.c.bf16 %v533_v41, %v529_v39  ;;  %v307_v41 = vunpack.c.h.bf16 %v105_v30 }
  0xaf   :  { %v666_v9 = vpack.c.bf16 %v526_v61, %v522_v60  ;;  %v512_v15 = vmul.f32 %v1628_v57, %v271_v25  ;;  %v511_v35 = vmul.f32 %v1759_v10, %v270_v21  ;;  %v300_v60 = vunpack.c.l.bf16 %v102_v24 }
  0xb0   :  { %v309_v63 = vunpack.c.h.bf16 %v106_v53  ;;  %v537_v25 = vmul.f32 %v1703_v32, %v296_v59  ;;  %v109_v59 = vld [vmem:[%s2524_s0 + $0x2f0] sm:$0xff] }
  0xb1   :  { %v659_v49 = vpack.c.bf16 %v515_v36, %v511_v35  ;;  %v298_v35 = vunpack.c.l.bf16 %v101_v7  ;;  %v112_v36 = vld [vmem:[%s2524_s0 + $0x308] sm:$0xff] }
  0xb2   :  { %v320_v7 = vunpack.c.l.bf16 %v112_v36 }
  0xb3   :  { %1016 = vmatmul.mubr.bf16.gmra.mxu0 %v643_v11  ;;  %v289_v11 = vunpack.c.h.bf16 %v96_v2  ;;  %v523_v2 = vmul.f32 %v1759_v10, %v282_v51 }
  0xb4   :  { %1023 = vmatprep.mubr.bf16.mxu0 %v648_v46  ;;  %1288 = vmatmul.mubr.bf16.gmra.mxu1 %v653_v16  ;;  %v516_v46 = vmul.f32 %v1628_v57, %v275_v5  ;;  %v91_v16 = vld [vmem:[%s2524_s0 + $0x260] sm:$0xff]  ;;  %v541_v5 = vmul.f32 %v1703_v32, %v300_v60 }
  0xb5   :  { %1460 = vmatprep.mubr.msk.bf16.mxu1 %vm782_vm0, %v658_v19  ;;  %v530_v18 = vmul.f32 %v1597_v45, %v289_v11  ;;  %v534_v19 = vmul.f32 %v1597_v45, %v293_v12  ;;  %v279_v27 = vunpack.c.h.bf16 %v91_v16  ;;  %v278_v50 = vunpack.c.l.bf16 %v91_v16 }
  0xb6   :  { %v660_v26 = vpack.c.bf16 %v516_v46, %v512_v15  ;;  %v110_v15 = vld [vmem:[%s2524_s0 + $0x2f8] sm:$0xff]  ;;  %v673_v16 = vpack.c.bf16 %v541_v5, %v537_v25  ;;  %v315_v5 = vunpack.c.h.bf16 %v109_v59 }
  0xb7   :  { %v670_v33 = vpack.c.bf16 %v534_v19, %v530_v18  ;;  %v520_v38 = vmul.f32 %v1628_v57, %v279_v27  ;;  %v519_v1 = vmul.f32 %v1759_v10, %v278_v50  ;;  %v308_v18 = vunpack.c.l.bf16 %v106_v53 }
  0xb8   :  { %v317_v21 = vunpack.c.h.bf16 %v110_v15  ;;  %v545_v27 = vmul.f32 %v1703_v32, %v304_v17  ;;  %v113_v17 = vld [vmem:[%s2524_s0 + $0x310] sm:$0xff] }
  0xb9   :  { %v663_v11 = vpack.c.bf16 %v523_v2, %v519_v1  ;;  %v306_v1 = vunpack.c.l.bf16 %v105_v30  ;;  %v116_v2 = vld [vmem:[%s2524_s0 + $0x328] sm:$0xff] }
  0xba   :  { %v328_v30 = vunpack.c.l.bf16 %v116_v2 }
  0xbb   :  { %1024 = vmatmul.mubr.bf16.gmra.mxu0 %v647_v0  ;;  %v297_v0 = vunpack.c.h.bf16 %v100_v23  ;;  %v531_v23 = vmul.f32 %v1759_v10, %v290_v13 }
  0xbc   :  { %1031 = vmatprep.mubr.bf16.mxu0 %v652_v37  ;;  %1296 = vmatmul.mubr.bf16.gmra.mxu1 %v657_v42  ;;  %v524_v37 = vmul.f32 %v1628_v57, %v283_v28  ;;  %v95_v42 = vld [vmem:[%s2524_s0 + $0x280] sm:$0xff]  ;;  %v549_v28 = vmul.f32 %v1703_v32, %v308_v18 }
  0xbd   :  { %1461 = vmatprep.mubr.msk.bf16.mxu1 %vm782_vm0, %v662_v48  ;;  %v538_v44 = vmul.f32 %v1597_v45, %v297_v0  ;;  %v542_v48 = vmul.f32 %v1597_v45, %v301_v34  ;;  %v287_v55 = vunpack.c.h.bf16 %v95_v42  ;;  %v286_v12 = vunpack.c.l.bf16 %v95_v42 }
  0xbe   :  { %v664_v54 = vpack.c.bf16 %v524_v37, %v520_v38  ;;  %v114_v38 = vld [vmem:[%s2524_s0 + $0x318] sm:$0xff]  ;;  %v677_v42 = vpack.c.bf16 %v549_v28, %v545_v27  ;;  %v323_v28 = vunpack.c.h.bf16 %v113_v17 }
  0xbf   :  { %v674_v61 = vpack.c.bf16 %v542_v48, %v538_v44  ;;  %v528_v3 = vmul.f32 %v1628_v57, %v287_v55  ;;  %v527_v22 = vmul.f32 %v1759_v10, %v286_v12  ;;  %v316_v44 = vunpack.c.l.bf16 %v110_v15 }
  0xc0   :  { %v325_v50 = vunpack.c.h.bf16 %v114_v38  ;;  %v553_v55 = vmul.f32 %v1703_v32, %v312_v43  ;;  %v115_v43 = vld [vmem:[%s2524_s0 + $0x320] sm:$0xff] }
  0xc1   :  { %v667_v0 = vpack.c.bf16 %v531_v23, %v527_v22  ;;  %v314_v22 = vunpack.c.l.bf16 %v109_v59  ;;  %v120_v23 = vld [vmem:[%s2524_s0 + $0x348] sm:$0xff] }
  0xc3   :  { %1032 = vmatmul.mubr.bf16.gmra.mxu0 %v651_v62  ;;  %v305_v62 = vunpack.c.h.bf16 %v104_v52  ;;  %v539_v52 = vmul.f32 %v1759_v10, %v298_v35 }
  0xc4   :  { %1039 = vmatprep.mubr.bf16.mxu0 %v656_v4  ;;  %1304 = vmatmul.mubr.bf16.gmra.mxu1 %v661_v6  ;;  %v532_v4 = vmul.f32 %v1628_v57, %v291_v56  ;;  %v99_v6 = vld [vmem:[%s2524_s0 + $0x2a0] sm:$0xff]  ;;  %v557_v56 = vmul.f32 %v1703_v32, %v316_v44  ;;  %v117_v44 = vld [vmem:[%s2524_s0 + $0x330] sm:$0xff] }
  0xc5   :  { %1462 = vmatprep.mubr.msk.bf16.mxu1 %vm782_vm0, %v666_v9  ;;  %v546_v8 = vmul.f32 %v1597_v45, %v305_v62  ;;  %v550_v9 = vmul.f32 %v1597_v45, %v309_v63  ;;  %v295_v40 = vunpack.c.h.bf16 %v99_v6  ;;  %v294_v34 = vunpack.c.l.bf16 %v99_v6 }
  0xc6   :  { %v668_v46 = vpack.c.bf16 %v532_v4, %v528_v3  ;;  %v118_v3 = vld [vmem:[%s2524_s0 + $0x338] sm:$0xff]  ;;  %v681_v6 = vpack.c.bf16 %v557_v56, %v553_v55  ;;  %v327_v56 = vunpack.c.h.bf16 %v115_v43 }
  0xc7   :  { %v678_v19 = vpack.c.bf16 %v550_v9, %v546_v8  ;;  %v536_v24 = vmul.f32 %v1628_v57, %v295_v40  ;;  %v535_v51 = vmul.f32 %v1759_v10, %v294_v34  ;;  %v324_v8 = vunpack.c.l.bf16 %v114_v38 }
  0xc8   :  { %v333_v12 = vunpack.c.h.bf16 %v118_v3  ;;  %v561_v40 = vmul.f32 %v1703_v32, %v320_v7 }
  0xc9   :  { %v671_v62 = vpack.c.bf16 %v539_v52, %v535_v51 }
  0xcb   :  { %1040 = vmatmul.mubr.bf16.gmra.mxu0 %v655_v20  ;;  %v313_v20 = vunpack.c.h.bf16 %v108_v14  ;;  %v547_v14 = vmul.f32 %v1759_v10, %v306_v1 }
  0xcc   :  { %1047 = vmatprep.mubr.bf16.mxu0 %v660_v26  ;;  %1312 = vmatmul.mubr.bf16.gmra.mxu1 %v665_v29  ;;  %v540_v26 = vmul.f32 %v1628_v57, %v299_v47  ;;  %v103_v29 = vld [vmem:[%s2524_s0 + $0x2c0] sm:$0xff]  ;;  %v565_v47 = vmul.f32 %v1703_v32, %v324_v8 }
  0xcd   :  { %1463 = vmatprep.mubr.msk.bf16.mxu1 %vm782_vm0, %v670_v33  ;;  %v554_v31 = vmul.f32 %v1597_v45, %v313_v20  ;;  %v558_v33 = vmul.f32 %v1597_v45, %v317_v21  ;;  %v303_v39 = vunpack.c.h.bf16 %v103_v29  ;;  %v302_v63 = vunpack.c.l.bf16 %v103_v29 }
  0xce   :  { %v672_v37 = vpack.c.bf16 %v540_v26, %v536_v24  ;;  %v122_v24 = vld [vmem:[%s2524_s0 + $0x358] sm:$0xff]  ;;  %v685_v29 = vpack.c.bf16 %v565_v47, %v561_v40 }
  0xcf   :  { %v682_v48 = vpack.c.bf16 %v558_v33, %v554_v31  ;;  %v544_v53 = vmul.f32 %v1628_v57, %v303_v39  ;;  %v543_v13 = vmul.f32 %v1759_v10, %v302_v63  ;;  %v332_v31 = vunpack.c.l.bf16 %v118_v3 }
  0xd0   :  { %v341_v34 = vunpack.c.h.bf16 %v122_v24 }
  0xd1   :  { %v675_v20 = vpack.c.bf16 %v547_v14, %v543_v13 }
  0xd3   :  { %1048 = vmatmul.mubr.bf16.gmra.mxu0 %v659_v49  ;;  %v321_v49 = vunpack.c.h.bf16 %v112_v36  ;;  %v555_v36 = vmul.f32 %v1759_v10, %v314_v22 }
  0xd4   :  { %1055 = vmatprep.mubr.bf16.mxu0 %v664_v54  ;;  %1320 = vmatmul.mubr.bf16.gmra.mxu1 %v669_v58  ;;  %v548_v54 = vmul.f32 %v1628_v57, %v307_v41  ;;  %v107_v58 = vld [vmem:[%s2524_s0 + $0x2e0] sm:$0xff]  ;;  %v569_v41 = vmul.f32 %v1703_v32, %v328_v30 }
  0xd5   :  { %1464 = vmatprep.mubr.msk.bf16.mxu1 %vm782_vm0, %v674_v61  ;;  %v562_v60 = vmul.f32 %v1597_v45, %v321_v49  ;;  %v566_v61 = vmul.f32 %v1597_v45, %v325_v50  ;;  %v311_v25 = vunpack.c.h.bf16 %v107_v58  ;;  %v310_v21 = vunpack.c.l.bf16 %v107_v58 }
  0xd6   :  { %v676_v4 = vpack.c.bf16 %v548_v54, %v544_v53  ;;  %v582_v49 = vmul.f32 %v1597_v45, %v341_v34  ;;  %v322_v53 = vunpack.c.l.bf16 %v113_v17  ;;  %v124_v54 = vld [vmem:[%s2524_s0 + $0x368] sm:$0xff]  ;;  %v331_v58 = vunpack.c.h.bf16 %v117_v44 }
  0xd7   :  { %v686_v9 = vpack.c.bf16 %v566_v61, %v562_v60  ;;  %v552_v15 = vmul.f32 %v1628_v57, %v311_v25  ;;  %v551_v35 = vmul.f32 %v1759_v10, %v310_v21  ;;  %v336_v61 = vunpack.c.l.bf16 %v120_v23 }
  0xd8   :  { %v345_v1 = vunpack.c.h.bf16 %v124_v54  ;;  %v563_v3 = vmul.f32 %v1759_v10, %v322_v53  ;;  %v568_v25 = vmul.f32 %v1628_v57, %v327_v56 }
  0xd9   :  { %v679_v50 = vpack.c.bf16 %v555_v36, %v551_v35  ;;  %v577_v7 = vmul.f32 %v1703_v32, %v336_v61 }
  0xdb   :  { %1056 = vmatmul.mubr.bf16.gmra.mxu0 %v663_v11  ;;  %v329_v11 = vunpack.c.h.bf16 %v116_v2 }
  0xdc   :  { %1063 = vmatprep.mubr.bf16.mxu0 %v668_v46  ;;  %1328 = vmatmul.mubr.bf16.gmra.mxu1 %v673_v16  ;;  %v556_v46 = vmul.f32 %v1628_v57, %v315_v5  ;;  %v111_v16 = vld [vmem:[%s2524_s0 + $0x300] sm:$0xff]  ;;  %v572_v5 = vmul.f32 %v1628_v57, %v331_v58 }
  0xdd   :  { %1465 = vmatprep.mubr.msk.bf16.mxu1 %vm782_vm0, %v678_v19  ;;  %v570_v18 = vmul.f32 %v1597_v45, %v329_v11  ;;  %v574_v19 = vmul.f32 %v1597_v45, %v333_v12  ;;  %v319_v27 = vunpack.c.h.bf16 %v111_v16  ;;  %v318_v52 = vunpack.c.l.bf16 %v111_v16  ;;  %v121_v11 = vld [vmem:[%s2524_s0 + $0x350] sm:$0xff] }
  0xde   :  { %v680_v26 = vpack.c.bf16 %v556_v46, %v552_v15  ;;  %v586_v12 = vmul.f32 %v1597_v45, %v345_v1  ;;  %v326_v15 = vunpack.c.l.bf16 %v115_v43  ;;  %v330_v46 = vunpack.c.l.bf16 %v117_v44 }
  0xdf   :  { %v690_v33 = vpack.c.bf16 %v574_v19, %v570_v18  ;;  %v560_v38 = vmul.f32 %v1628_v57, %v319_v27  ;;  %v559_v2 = vmul.f32 %v1759_v10, %v318_v52  ;;  %v688_v40 = vpack.c.bf16 %v572_v5, %v568_v25 }
  0xe0   :  { %v339_v16 = vunpack.c.h.bf16 %v121_v11  ;;  %v344_v19 = vunpack.c.l.bf16 %v124_v54  ;;  %v567_v22 = vmul.f32 %v1759_v10, %v326_v15  ;;  %v338_v36 = vunpack.c.l.bf16 %v121_v11 }
  0xe1   :  { %v683_v13 = vpack.c.bf16 %v563_v3, %v559_v2 }
  0xe2   :  { %v580_v27 = vmul.f32 %v1628_v57, %v339_v16  ;;  %v585_v30 = vmul.f32 %v1703_v32, %v344_v19 }
  0xe3   :  { %1064 = vmatmul.mubr.bf16.gmra.mxu0 %v667_v0  ;;  %v337_v0 = vunpack.c.h.bf16 %v120_v23  ;;  %v571_v23 = vmul.f32 %v1759_v10, %v330_v46 }
  0xe4   :  { %1071 = vmatprep.mubr.bf16.mxu0 %v672_v37  ;;  %1336 = vmatmul.mubr.bf16.gmra.mxu1 %v677_v42  ;;  %v564_v37 = vmul.f32 %v1628_v57, %v323_v28  ;;  %v573_v42 = vmul.f32 %v1703_v32, %v332_v31  ;;  %v123_v31 = vld [vmem:[%s2524_s0 + $0x360] sm:$0xff] }
  0xe5   :  { %1466 = vmatprep.mubr.msk.bf16.mxu1 %vm782_vm0, %v682_v48  ;;  %v578_v48 = vmul.f32 %v1597_v45, %v337_v0  ;;  %v687_v0 = vpack.c.bf16 %v571_v23, %v567_v22  ;;  %v342_v58 = vunpack.c.l.bf16 %v123_v31 }
  0xe6   :  { %v684_v55 = vpack.c.bf16 %v564_v37, %v560_v38  ;;  %v689_v60 = vpack.c.bf16 %v573_v42, %v569_v41  ;;  %v697_v42 = vpack.c.bf16 %v585_v30, %v585_v30 }
  0xe7   :  { %v694_v63 = vpack.c.bf16 %v582_v49, %v578_v48  ;;  %v579_v48 = vmul.f32 %v1759_v10, %v338_v36 }
  0xeb   :  { %1072 = vmatmul.mubr.bf16.gmra.mxu0 %v671_v62  ;;  %v340_v62 = vunpack.c.l.bf16 %v122_v24 }
  0xec   :  { %1079 = vmatprep.mubr.bf16.mxu0 %v676_v4  ;;  %1344 = vmatmul.mubr.bf16.gmra.mxu1 %v681_v6 }
  0xed   :  { %1467 = vmatprep.mubr.msk.bf16.mxu1 %vm782_vm0, %v686_v9  ;;  %v581_v8 = vmul.f32 %v1703_v32, %v340_v62  ;;  %v119_v9 = vld [vmem:[%s2524_s0 + $0x340] sm:$0xff] }
  0xee   :  { %v335_v47 = vunpack.c.h.bf16 %v119_v9  ;;  %v334_v35 = vunpack.c.l.bf16 %v119_v9 }
  0xef   :  { %v693_v18 = vpack.c.bf16 %v581_v8, %v577_v7 }
  0xf0   :  { %v575_v44 = vmul.f32 %v1759_v10, %v334_v35 }
  0xf3   :  { %1080 = vmatmul.mubr.bf16.gmra.mxu0 %v675_v20  ;;  %v698_v20 = vpack.c.bf16 %v586_v12, %v586_v12 }
  0xf4   :  { %1087 = vmatprep.mubr.bf16.mxu0 %v680_v26  ;;  %v1161_v39 = vpop.f32.mrf.mxu1  ;;  %1352 = vmatmul.mubr.bf16.gmra.mxu1 %v685_v29  ;;  %v576_v26 = vmul.f32 %v1628_v57, %v335_v47 }
  0xf5   :  { %1468 = vmatprep.mubr.msk.bf16.mxu1 %vm782_vm0, %v690_v33 }
  0xf6   :  { %v1163_v51 = vpop.f32.mrf.mxu1  ;;  %v692_v37 = vpack.c.bf16 %v580_v27, %v576_v26 }
  0xf8   :  { %v1164_v59 = vpop.f32.mrf.mxu1 }
  0xfa   :  { %v1166_v4 = vpop.f32.mrf.mxu1 }
  0xfb   :  { %1088 = vmatmul.mubr.bf16.gmra.mxu0 %v679_v50 }
  0xfc   :  { %1095 = vmatprep.mubr.bf16.mxu0 %v684_v55  ;;  %v1169_v6 = vpop.f32.mrf.mxu1  ;;  %1360 = vmatmul.mubr.bf16.gmra.mxu1 %v689_v60  ;;  %v691_v55 = vpack.c.bf16 %v579_v48, %v575_v44 }
  0xfd   :  { %1469 = vmatprep.mubr.msk.bf16.mxu1 %vm782_vm0, %v694_v63  ;;  %v583_v63 = vmul.f32 %v1759_v10, %v342_v58 }
  0xfe   :  { %v1171_v14 = vpop.f32.mrf.mxu1 }
  0xff   :  { %v695_v5 = vpack.c.bf16 %v583_v63, %v583_v63 }
 0x100   :  { %v1172_v17 = vpop.f32.mrf.mxu1 }
 0x102   :  { %v1174_v24 = vpop.f32.mrf.mxu1 }
 0x103   :  { %v905_v21 = vpop.f32.mrf.mxu0  ;;  %1096 = vmatmul.mubr.bf16.gmra.mxu0 %v683_v13 }
 0x104   :  { %v1162_v45 = vadd.f32 %v1161_v39, %v905_v21  ;;  %1103 = vmatprep.mubr.bf16.mxu0 %v688_v40  ;;  %v1177_v29 = vpop.f32.mrf.mxu1  ;;  %1368 = vmatmul.mubr.bf16.gmra.mxu1 %v693_v18  ;;  %v343_v39 = vunpack.c.h.bf16 %v123_v31 }
 0x105   :  { %v907_v28 = vpop.f32.mrf.mxu0  ;;  %1470 = vmatprep.mubr.msk.bf16.mxu1 %vm782_vm0, %v698_v20 }
 0x106   :  { %1384 = vst.msk [vmem:[%s2526_s3] sm:$0xff] %vm1383_vm2, %v1162_v45  ;;  %v1179_v34 = vpop.f32.mrf.mxu1  ;;  %v584_v51 = vmul.f32 %v1628_v57, %v343_v39 }
 0x107   :  { %v908_v33 = vpop.f32.mrf.mxu0 }
 0x108   :  { %v1165_v38 = vadd.f32 %v1164_v59, %v908_v33  ;;  %v1180_v41 = vpop.f32.mrf.mxu1  ;;  %v696_v60 = vpack.c.bf16 %v584_v51, %v584_v51 }
 0x109   :  { %v910_v32 = vpop.f32.mrf.mxu0 }
 0x10a   :  { %1385 = vst.msk [vmem:[%s2526_s3 + $0x8] sm:$0xff] %vm1383_vm2, %v1165_v38  ;;  %v1182_v49 = vpop.f32.mrf.mxu1 }
 0x10b   :  { %v913_v43 = vpop.f32.mrf.mxu0  ;;  %1104 = vmatmul.mubr.bf16.gmra.mxu0 %v687_v0 }
 0x10c   :  { %v1170_v50 = vadd.f32 %v1169_v6, %v913_v43  ;;  %1111 = vmatprep.mubr.bf16.mxu0 %v692_v37  ;;  %v1185_v53 = vpop.f32.mrf.mxu1  ;;  %1376 = vmatmul.mubr.bf16.gmra.mxu1 %v697_v42 }
 0x10d   :  { %v915_v52 = vpop.f32.mrf.mxu0 }
 0x10e   :  { %1386 = vst.msk [vmem:[%s2526_s3 + $0x10] sm:$0xff] %vm1383_vm2, %v1170_v50  ;;  %v1187_v56 = vpop.f32.mrf.mxu1 }
 0x10f   :  { %v916_v54 = vpop.f32.mrf.mxu0 }
 0x110   :  { %v1173_v59 = vadd.f32 %v1172_v17, %v916_v54  ;;  %v1188_v62 = vpop.f32.mrf.mxu1 }
 0x111   :  { %v918_v61 = vpop.f32.mrf.mxu0 }
 0x112   :  { %1387 = vst.msk [vmem:[%s2526_s3 + $0x18] sm:$0xff] %vm1383_vm2, %v1173_v59  ;;  %v1190_v1 = vpop.f32.mrf.mxu1 }
 0x113   :  { %v921_v57 = vpop.f32.mrf.mxu0  ;;  %1112 = vmatmul.mubr.bf16.gmra.mxu0 %v691_v55 }
 0x114   :  { %v1178_v2 = vadd.f32 %v1177_v29, %v921_v57  ;;  %1119 = vmatprep.mubr.bf16.mxu0 %v696_v60  ;;  %v1193_v4 = vpop.f32.mrf.mxu1 }
 0x115   :  { %v923_v3 = vpop.f32.mrf.mxu0 }
 0x116   :  { %1388 = vst.msk [vmem:[%s2526_s3 + $0x20] sm:$0xff] %vm1383_vm2, %v1178_v2  ;;  %v1195_v6 = vpop.f32.mrf.mxu1 }
 0x117   :  { %v924_v25 = vpop.f32.mrf.mxu0 }
 0x118   :  { %v1181_v7 = vadd.f32 %v1180_v41, %v924_v25  ;;  %v1196_v9 = vpop.f32.mrf.mxu1 }
 0x119   :  { %v926_v8 = vpop.f32.mrf.mxu0 }
 0x11a   :  { %1389 = vst.msk [vmem:[%s2526_s3 + $0x28] sm:$0xff] %vm1383_vm2, %v1181_v7  ;;  %v1198_v11 = vpop.f32.mrf.mxu1 }
 0x11b   :  { %v929_v10 = vpop.f32.mrf.mxu0  ;;  %1120 = vmatmul.mubr.bf16.gmra.mxu0 %v695_v5 }
 0x11c   :  { %v1186_v12 = vadd.f32 %v1185_v53, %v929_v10  ;;  %v1201_v14 = vpop.f32.mrf.mxu1 }
 0x11d   :  { %v931_v13 = vpop.f32.mrf.mxu0 }
 0x11e   :  { %1390 = vst.msk [vmem:[%s2526_s3 + $0x30] sm:$0xff] %vm1383_vm2, %v1186_v12  ;;  %v1203_v46 = vpop.f32.mrf.mxu1 }
 0x11f   :  { %v932_v15 = vpop.f32.mrf.mxu0 }
 0x120   :  { %v1189_v40 = vadd.f32 %v1188_v62, %v932_v15  ;;  %v1204_v16 = vpop.f32.mrf.mxu1 }
 0x121   :  { %v934_v47 = vpop.f32.mrf.mxu0 }
 0x122   :  { %1391 = vst.msk [vmem:[%s2526_s3 + $0x38] sm:$0xff] %vm1383_vm2, %v1189_v40  ;;  %v1206_v18 = vpop.f32.mrf.mxu1 }
 0x123   :  { %v937_v17 = vpop.f32.mrf.mxu0 }
 0x124   :  { %v1194_v19 = vadd.f32 %v1193_v4, %v937_v17  ;;  %v1209_v21 = vpop.f32.mrf.mxu1 }
 0x125   :  { %v939_v20 = vpop.f32.mrf.mxu0 }
 0x126   :  { %1392 = vst.msk [vmem:[%s2526_s3 + $0x40] sm:$0xff] %vm1383_vm2, %v1194_v19  ;;  %v1211_v23 = vpop.f32.mrf.mxu1 }
 0x127   :  { %v940_v22 = vpop.f32.mrf.mxu0 }
 0x128   :  { %v1197_v24 = vadd.f32 %v1196_v9, %v940_v22  ;;  %v1212_v26 = vpop.f32.mrf.mxu1 }
 0x129   :  { %v942_v45 = vpop.f32.mrf.mxu0 }
 0x12a   :  { %1393 = vst.msk [vmem:[%s2526_s3 + $0x48] sm:$0xff] %vm1383_vm2, %v1197_v24  ;;  %v1214_v28 = vpop.f32.mrf.mxu1 }
 0x12b   :  { %v945_v27 = vpop.f32.mrf.mxu0 }
 0x12c   :  { %v1202_v29 = vadd.f32 %v1201_v14, %v945_v27  ;;  %v1217_v31 = vpop.f32.mrf.mxu1 }
 0x12d   :  { %v947_v30 = vpop.f32.mrf.mxu0 }
 0x12e   :  { %1394 = vst.msk [vmem:[%s2526_s3 + $0x50] sm:$0xff] %vm1383_vm2, %v1202_v29  ;;  %v1219_v0 = vpop.f32.mrf.mxu1 }
 0x12f   :  { %v948_v33 = vpop.f32.mrf.mxu0 }
 0x130   :  { %v1205_v34 = vadd.f32 %v1204_v16, %v948_v33  ;;  %v1220_v36 = vpop.f32.mrf.mxu1 }
 0x131   :  { %v950_v35 = vpop.f32.mrf.mxu0 }
 0x132   :  { %1395 = vst.msk [vmem:[%s2526_s3 + $0x58] sm:$0xff] %vm1383_vm2, %v1205_v34  ;;  %v1222_v37 = vpop.f32.mrf.mxu1 }
 0x133   :  { %v953_v38 = vpop.f32.mrf.mxu0 }
 0x134   :  { %v1210_v39 = vadd.f32 %v1209_v21, %v953_v38  ;;  %v1225_v41 = vpop.f32.mrf.mxu1 }
 0x135   :  { %v955_v32 = vpop.f32.mrf.mxu0 }
 0x136   :  { %1396 = vst.msk [vmem:[%s2526_s3 + $0x60] sm:$0xff] %vm1383_vm2, %v1210_v39  ;;  %v1227_v43 = vpop.f32.mrf.mxu1 }
 0x137   :  { %v956_v42 = vpop.f32.mrf.mxu0 }
 0x138   :  { %v1213_v44 = vadd.f32 %v1212_v26, %v956_v42  ;;  %v1228_v49 = vpop.f32.mrf.mxu1 }
 0x139   :  { %v958_v48 = vpop.f32.mrf.mxu0 }
 0x13a   :  { %1397 = vst.msk [vmem:[%s2526_s3 + $0x68] sm:$0xff] %vm1383_vm2, %v1213_v44  ;;  %v1230_v51 = vpop.f32.mrf.mxu1 }
 0x13b   :  { %v961_v50 = vpop.f32.mrf.mxu0 }
 0x13c   :  { %v1218_v52 = vadd.f32 %v1217_v31, %v961_v50  ;;  %v1233_v54 = vpop.f32.mrf.mxu1 }
 0x13d   :  { %v963_v53 = vpop.f32.mrf.mxu0 }
 0x13e   :  { %1398 = vst.msk [vmem:[%s2526_s3 + $0x70] sm:$0xff] %vm1383_vm2, %v1218_v52  ;;  %v1235_v56 = vpop.f32.mrf.mxu1 }
 0x13f   :  { %v964_v55 = vpop.f32.mrf.mxu0 }
 0x140   :  { %v1221_v58 = vadd.f32 %v1220_v36, %v964_v55  ;;  %v1236_v60 = vpop.f32.mrf.mxu1 }
 0x141   :  { %v966_v59 = vpop.f32.mrf.mxu0 }
 0x142   :  { %1399 = vst.msk [vmem:[%s2526_s3 + $0x78] sm:$0xff] %vm1383_vm2, %v1221_v58  ;;  %v1238_v62 = vpop.f32.mrf.mxu1 }
 0x143   :  { %v969_v61 = vpop.f32.mrf.mxu0 }
 0x144   :  { %v1226_v57 = vadd.f32 %v1225_v41, %v969_v61  ;;  %v1241_v1 = vpop.f32.mrf.mxu1 }
 0x145   :  { %v971_v63 = vpop.f32.mrf.mxu0 }
 0x146   :  { %1400 = vst.msk [vmem:[%s2526_s3 + $0x80] sm:$0xff] %vm1383_vm2, %v1226_v57  ;;  %v1243_v3 = vpop.f32.mrf.mxu1 }
 0x147   :  { %v972_v2 = vpop.f32.mrf.mxu0 }
 0x148   :  { %v1229_v4 = vadd.f32 %v1228_v49, %v972_v2  ;;  %v1244_v5 = vpop.f32.mrf.mxu1 }
 0x149   :  { %v974_v25 = vpop.f32.mrf.mxu0 }
 0x14a   :  { %1401 = vst.msk [vmem:[%s2526_s3 + $0x88] sm:$0xff] %vm1383_vm2, %v1229_v4  ;;  %v1246_v7 = vpop.f32.mrf.mxu1 }
 0x14b   :  { %v977_v6 = vpop.f32.mrf.mxu0 }
 0x14c   :  { %v1234_v8 = vadd.f32 %v1233_v54, %v977_v6  ;;  %v1249_v10 = vpop.f32.mrf.mxu1 }
 0x14d   :  { %v979_v9 = vpop.f32.mrf.mxu0 }
 0x14e   :  { %1402 = vst.msk [vmem:[%s2526_s3 + $0x90] sm:$0xff] %vm1383_vm2, %v1234_v8  ;;  %v1251_v12 = vpop.f32.mrf.mxu1 }
 0x14f   :  { %v980_v11 = vpop.f32.mrf.mxu0 }
 0x150   :  { %v1237_v13 = vadd.f32 %v1236_v60, %v980_v11  ;;  %v1252_v15 = vpop.f32.mrf.mxu1 }
 0x151   :  { %v982_v14 = vpop.f32.mrf.mxu0 }
 0x152   :  { %1403 = vst.msk [vmem:[%s2526_s3 + $0x98] sm:$0xff] %vm1383_vm2, %v1237_v13  ;;  %v1254_v40 = vpop.f32.mrf.mxu1 }
 0x153   :  { %v985_v46 = vpop.f32.mrf.mxu0 }
 0x154   :  { %v1242_v47 = vadd.f32 %v1241_v1, %v985_v46  ;;  %v1257_v17 = vpop.f32.mrf.mxu1 }
 0x155   :  { %v987_v16 = vpop.f32.mrf.mxu0 }
 0x156   :  { %1404 = vst.msk [vmem:[%s2526_s3 + $0xa0] sm:$0xff] %vm1383_vm2, %v1242_v47  ;;  %v1259_v19 = vpop.f32.mrf.mxu1 }
 0x157   :  { %v988_v18 = vpop.f32.mrf.mxu0 }
 0x158   :  { %v1245_v20 = vadd.f32 %v1244_v5, %v988_v18  ;;  %v1260_v22 = vpop.f32.mrf.mxu1 }
 0x159   :  { %v990_v21 = vpop.f32.mrf.mxu0 }
 0x15a   :  { %1405 = vst.msk [vmem:[%s2526_s3 + $0xa8] sm:$0xff] %vm1383_vm2, %v1245_v20  ;;  %v1262_v24 = vpop.f32.mrf.mxu1 }
 0x15b   :  { %v993_v23 = vpop.f32.mrf.mxu0 }
 0x15c   :  { %v1250_v45 = vadd.f32 %v1249_v10, %v993_v23  ;;  %v1265_v27 = vpop.f32.mrf.mxu1 }
 0x15d   :  { %v995_v26 = vpop.f32.mrf.mxu0 }
 0x15e   :  { %1406 = vst.msk [vmem:[%s2526_s3 + $0xb0] sm:$0xff] %vm1383_vm2, %v1250_v45  ;;  %v1267_v29 = vpop.f32.mrf.mxu1 }
 0x15f   :  { %v996_v28 = vpop.f32.mrf.mxu0 }
 0x160   :  { %v1253_v30 = vadd.f32 %v1252_v15, %v996_v28  ;;  %v1268_v33 = vpop.f32.mrf.mxu1 }
 0x161   :  { %v998_v31 = vpop.f32.mrf.mxu0 }
 0x162   :  { %1407 = vst.msk [vmem:[%s2526_s3 + $0xb8] sm:$0xff] %vm1383_vm2, %v1253_v30  ;;  %v1270_v34 = vpop.f32.mrf.mxu1 }
 0x163   :  { %v1001_v0 = vpop.f32.mrf.mxu0 }
 0x164   :  { %v1258_v35 = vadd.f32 %v1257_v17, %v1001_v0  ;;  %v1273_v38 = vpop.f32.mrf.mxu1 }
 0x165   :  { %v1003_v36 = vpop.f32.mrf.mxu0 }
 0x166   :  { %1408 = vst.msk [vmem:[%s2526_s3 + $0xc0] sm:$0xff] %vm1383_vm2, %v1258_v35  ;;  %v1275_v39 = vpop.f32.mrf.mxu1 }
 0x167   :  { %v1004_v37 = vpop.f32.mrf.mxu0 }
 0x168   :  { %v1261_v32 = vadd.f32 %v1260_v22, %v1004_v37  ;;  %v1276_v42 = vpop.f32.mrf.mxu1 }
 0x169   :  { %v1006_v41 = vpop.f32.mrf.mxu0 }
 0x16a   :  { %1409 = vst.msk [vmem:[%s2526_s3 + $0xc8] sm:$0xff] %vm1383_vm2, %v1261_v32  ;;  %v1278_v44 = vpop.f32.mrf.mxu1 }
 0x16b   :  { %v1009_v43 = vpop.f32.mrf.mxu0 }
 0x16c   :  { %v1266_v48 = vadd.f32 %v1265_v27, %v1009_v43  ;;  %v1281_v50 = vpop.f32.mrf.mxu1 }
 0x16d   :  { %v1011_v49 = vpop.f32.mrf.mxu0 }
 0x16e   :  { %1410 = vst.msk [vmem:[%s2526_s3 + $0xd0] sm:$0xff] %vm1383_vm2, %v1266_v48  ;;  %v1283_v52 = vpop.f32.mrf.mxu1 }
 0x16f   :  { %v1012_v51 = vpop.f32.mrf.mxu0 }
 0x170   :  { %v1269_v53 = vadd.f32 %v1268_v33, %v1012_v51  ;;  %v1284_v55 = vpop.f32.mrf.mxu1 }
 0x171   :  { %v1014_v54 = vpop.f32.mrf.mxu0 }
 0x172   :  { %1411 = vst.msk [vmem:[%s2526_s3 + $0xd8] sm:$0xff] %vm1383_vm2, %v1269_v53  ;;  %v1286_v58 = vpop.f32.mrf.mxu1 }
 0x173   :  { %v1017_v56 = vpop.f32.mrf.mxu0 }
 0x174   :  { %v1274_v59 = vadd.f32 %v1273_v38, %v1017_v56  ;;  %v1289_v61 = vpop.f32.mrf.mxu1 }
 0x175   :  { %v1019_v60 = vpop.f32.mrf.mxu0 }
 0x176   :  { %1412 = vst.msk [vmem:[%s2526_s3 + $0xe0] sm:$0xff] %vm1383_vm2, %v1274_v59  ;;  %v1291_v57 = vpop.f32.mrf.mxu1 }
 0x177   :  { %v1020_v62 = vpop.f32.mrf.mxu0 }
 0x178   :  { %v1277_v63 = vadd.f32 %v1276_v42, %v1020_v62  ;;  %v1292_v2 = vpop.f32.mrf.mxu1 }
 0x179   :  { %v1022_v1 = vpop.f32.mrf.mxu0 }
 0x17a   :  { %1413 = vst.msk [vmem:[%s2526_s3 + $0xe8] sm:$0xff] %vm1383_vm2, %v1277_v63  ;;  %v1294_v4 = vpop.f32.mrf.mxu1 }
 0x17b   :  { %v1025_v3 = vpop.f32.mrf.mxu0 }
 0x17c   :  { %v1282_v25 = vadd.f32 %v1281_v50, %v1025_v3  ;;  %v1297_v6 = vpop.f32.mrf.mxu1 }
 0x17d   :  { %v1027_v5 = vpop.f32.mrf.mxu0 }
 0x17e   :  { %1414 = vst.msk [vmem:[%s2526_s3 + $0xf0] sm:$0xff] %vm1383_vm2, %v1282_v25  ;;  %v1299_v8 = vpop.f32.mrf.mxu1 }
 0x17f   :  { %v1028_v7 = vpop.f32.mrf.mxu0 }
 0x180   :  { %v1285_v9 = vadd.f32 %v1284_v55, %v1028_v7  ;;  %v1300_v11 = vpop.f32.mrf.mxu1 }
 0x181   :  { %v1030_v10 = vpop.f32.mrf.mxu0 }
 0x182   :  { %1415 = vst.msk [vmem:[%s2526_s3 + $0xf8] sm:$0xff] %vm1383_vm2, %v1285_v9  ;;  %v1302_v13 = vpop.f32.mrf.mxu1 }
 0x183   :  { %v1033_v12 = vpop.f32.mrf.mxu0 }
 0x184   :  { %v1290_v14 = vadd.f32 %v1289_v61, %v1033_v12  ;;  %v1305_v46 = vpop.f32.mrf.mxu1 }
 0x185   :  { %v1035_v15 = vpop.f32.mrf.mxu0 }
 0x186   :  { %1416 = vst.msk [vmem:[%s2526_s3 + $0x100] sm:$0xff] %vm1383_vm2, %v1290_v14  ;;  %v1307_v47 = vpop.f32.mrf.mxu1 }
 0x187   :  { %v1036_v40 = vpop.f32.mrf.mxu0 }
 0x188   :  { %v1293_v16 = vadd.f32 %v1292_v2, %v1036_v40  ;;  %v1308_v18 = vpop.f32.mrf.mxu1 }
 0x189   :  { %v1038_v17 = vpop.f32.mrf.mxu0 }
 0x18a   :  { %1417 = vst.msk [vmem:[%s2526_s3 + $0x108] sm:$0xff] %vm1383_vm2, %v1293_v16  ;;  %v1310_v20 = vpop.f32.mrf.mxu1 }
 0x18b   :  { %v1041_v19 = vpop.f32.mrf.mxu0 }
 0x18c   :  { %v1298_v21 = vadd.f32 %v1297_v6, %v1041_v19  ;;  %v1313_v23 = vpop.f32.mrf.mxu1 }
 0x18d   :  { %v1043_v22 = vpop.f32.mrf.mxu0 }
 0x18e   :  { %1418 = vst.msk [vmem:[%s2526_s3 + $0x110] sm:$0xff] %vm1383_vm2, %v1298_v21  ;;  %v1315_v45 = vpop.f32.mrf.mxu1 }
 0x18f   :  { %v1044_v24 = vpop.f32.mrf.mxu0 }
 0x190   :  { %v1301_v26 = vadd.f32 %v1300_v11, %v1044_v24  ;;  %v1316_v28 = vpop.f32.mrf.mxu1 }
 0x191   :  { %v1046_v27 = vpop.f32.mrf.mxu0 }
 0x192   :  { %1419 = vst.msk [vmem:[%s2526_s3 + $0x118] sm:$0xff] %vm1383_vm2, %v1301_v26  ;;  %v1318_v30 = vpop.f32.mrf.mxu1 }
 0x193   :  { %v1049_v29 = vpop.f32.mrf.mxu0 }
 0x194   :  { %v1306_v31 = vadd.f32 %v1305_v46, %v1049_v29  ;;  %v1321_v0 = vpop.f32.mrf.mxu1 }
 0x195   :  { %v1051_v33 = vpop.f32.mrf.mxu0 }
 0x196   :  { %1420 = vst.msk [vmem:[%s2526_s3 + $0x120] sm:$0xff] %vm1383_vm2, %v1306_v31  ;;  %v1323_v35 = vpop.f32.mrf.mxu1 }
 0x197   :  { %v1052_v34 = vpop.f32.mrf.mxu0 }
 0x198   :  { %v1309_v36 = vadd.f32 %v1308_v18, %v1052_v34  ;;  %v1324_v37 = vpop.f32.mrf.mxu1 }
 0x199   :  { %v1054_v38 = vpop.f32.mrf.mxu0 }
 0x19a   :  { %1421 = vst.msk [vmem:[%s2526_s3 + $0x128] sm:$0xff] %vm1383_vm2, %v1309_v36  ;;  %v1326_v32 = vpop.f32.mrf.mxu1 }
 0x19b   :  { %v1057_v39 = vpop.f32.mrf.mxu0 }
 0x19c   :  { %v1314_v41 = vadd.f32 %v1313_v23, %v1057_v39  ;;  %v1329_v43 = vpop.f32.mrf.mxu1 }
 0x19d   :  { %v1059_v42 = vpop.f32.mrf.mxu0 }
 0x19e   :  { %1422 = vst.msk [vmem:[%s2526_s3 + $0x130] sm:$0xff] %vm1383_vm2, %v1314_v41  ;;  %v1331_v48 = vpop.f32.mrf.mxu1 }
 0x19f   :  { %v1060_v44 = vpop.f32.mrf.mxu0 }
 0x1a0   :  { %v1317_v49 = vadd.f32 %v1316_v28, %v1060_v44  ;;  %v1332_v51 = vpop.f32.mrf.mxu1 }
 0x1a1   :  { %v1062_v50 = vpop.f32.mrf.mxu0 }
 0x1a2   :  { %1423 = vst.msk [vmem:[%s2526_s3 + $0x138] sm:$0xff] %vm1383_vm2, %v1317_v49  ;;  %v1334_v53 = vpop.f32.mrf.mxu1 }
 0x1a3   :  { %v1065_v52 = vpop.f32.mrf.mxu0 }
 0x1a4   :  { %v1322_v54 = vadd.f32 %v1321_v0, %v1065_v52  ;;  %v1337_v56 = vpop.f32.mrf.mxu1 }
 0x1a5   :  { %v1067_v55 = vpop.f32.mrf.mxu0 }
 0x1a6   :  { %1424 = vst.msk [vmem:[%s2526_s3 + $0x140] sm:$0xff] %vm1383_vm2, %v1322_v54  ;;  %v1339_v59 = vpop.f32.mrf.mxu1 }
 0x1a7   :  { %v1068_v58 = vpop.f32.mrf.mxu0 }
 0x1a8   :  { %v1325_v60 = vadd.f32 %v1324_v37, %v1068_v58  ;;  %v1340_v62 = vpop.f32.mrf.mxu1 }
 0x1a9   :  { %v1070_v61 = vpop.f32.mrf.mxu0 }
 0x1aa   :  { %1425 = vst.msk [vmem:[%s2526_s3 + $0x148] sm:$0xff] %vm1383_vm2, %v1325_v60  ;;  %v1342_v63 = vpop.f32.mrf.mxu1 }
 0x1ab   :  { %v1073_v57 = vpop.f32.mrf.mxu0 }
 0x1ac   :  { %v1330_v1 = vadd.f32 %v1329_v43, %v1073_v57  ;;  %v1345_v3 = vpop.f32.mrf.mxu1 }
 0x1ad   :  { %v1075_v2 = vpop.f32.mrf.mxu0 }
 0x1ae   :  { %1426 = vst.msk [vmem:[%s2526_s3 + $0x150] sm:$0xff] %vm1383_vm2, %v1330_v1  ;;  %v1347_v25 = vpop.f32.mrf.mxu1 }
 0x1af   :  { %v1076_v4 = vpop.f32.mrf.mxu0 }
 0x1b0   :  { %v1333_v5 = vadd.f32 %v1332_v51, %v1076_v4  ;;  %v1348_v7 = vpop.f32.mrf.mxu1 }
 0x1b1   :  { %v1078_v6 = vpop.f32.mrf.mxu0 }
 0x1b2   :  { %1427 = vst.msk [vmem:[%s2526_s3 + $0x158] sm:$0xff] %vm1383_vm2, %v1333_v5  ;;  %v1350_v9 = vpop.f32.mrf.mxu1 }
 0x1b3   :  { %v1081_v8 = vpop.f32.mrf.mxu0 }
 0x1b4   :  { %v1338_v10 = vadd.f32 %v1337_v56, %v1081_v8  ;;  %v1353_v12 = vpop.f32.mrf.mxu1 }
 0x1b5   :  { %v1083_v11 = vpop.f32.mrf.mxu0 }
 0x1b6   :  { %1428 = vst.msk [vmem:[%s2526_s3 + $0x160] sm:$0xff] %vm1383_vm2, %v1338_v10  ;;  %v1355_v14 = vpop.f32.mrf.mxu1 }
 0x1b7   :  { %v1084_v13 = vpop.f32.mrf.mxu0 }
 0x1b8   :  { %v1341_v15 = vadd.f32 %v1340_v62, %v1084_v13  ;;  %v1356_v40 = vpop.f32.mrf.mxu1 }
 0x1b9   :  { %v1086_v46 = vpop.f32.mrf.mxu0 }
 0x1ba   :  { %1429 = vst.msk [vmem:[%s2526_s3 + $0x168] sm:$0xff] %vm1383_vm2, %v1341_v15  ;;  %v1358_v16 = vpop.f32.mrf.mxu1 }
 0x1bb   :  { %v1089_v47 = vpop.f32.mrf.mxu0 }
 0x1bc   :  { %v1346_v17 = vadd.f32 %v1345_v3, %v1089_v47  ;;  %v1361_v19 = vpop.f32.mrf.mxu1 }
 0x1bd   :  { %v1091_v18 = vpop.f32.mrf.mxu0 }
 0x1be   :  { %1430 = vst.msk [vmem:[%s2526_s3 + $0x170] sm:$0xff] %vm1383_vm2, %v1346_v17  ;;  %v1363_v21 = vpop.f32.mrf.mxu1 }
 0x1bf   :  { %v1092_v20 = vpop.f32.mrf.mxu0 }
 0x1c0   :  { %v1349_v22 = vadd.f32 %v1348_v7, %v1092_v20  ;;  %v1364_v24 = vpop.f32.mrf.mxu1 }
 0x1c1   :  { %v1094_v23 = vpop.f32.mrf.mxu0 }
 0x1c2   :  { %1431 = vst.msk [vmem:[%s2526_s3 + $0x178] sm:$0xff] %vm1383_vm2, %v1349_v22  ;;  %v1366_v26 = vpop.f32.mrf.mxu1 }
 0x1c3   :  { %v1097_v45 = vpop.f32.mrf.mxu0 }
 0x1c4   :  { %v1354_v27 = vadd.f32 %v1353_v12, %v1097_v45  ;;  %v1369_v29 = vpop.f32.mrf.mxu1 }
 0x1c5   :  { %v1099_v28 = vpop.f32.mrf.mxu0 }
 0x1c6   :  { %1432 = vst.msk [vmem:[%s2526_s3 + $0x180] sm:$0xff] %vm1383_vm2, %v1354_v27  ;;  %v1371_v31 = vpop.f32.mrf.mxu1 }
 0x1c7   :  { %v1100_v30 = vpop.f32.mrf.mxu0 }
 0x1c8   :  { %v1357_v33 = vadd.f32 %v1356_v40, %v1100_v30  ;;  %v1372_v34 = vpop.f32.mrf.mxu1 }
 0x1c9   :  { %v1102_v0 = vpop.f32.mrf.mxu0 }
 0x1ca   :  { %1433 = vst.msk [vmem:[%s2526_s3 + $0x188] sm:$0xff] %vm1383_vm2, %v1357_v33  ;;  %v1374_v36 = vpop.f32.mrf.mxu1 }
 0x1cb   :  { %v1105_v35 = vpop.f32.mrf.mxu0 }
 0x1cc   :  { %v1362_v38 = vadd.f32 %v1361_v19, %v1105_v35  ;;  %v1377_v39 = vpop.f32.mrf.mxu1 }
 0x1cd   :  { %v1107_v37 = vpop.f32.mrf.mxu0 }
 0x1ce   :  { %1434 = vst.msk [vmem:[%s2526_s3 + $0x190] sm:$0xff] %vm1383_vm2, %v1362_v38  ;;  %v1379_v41 = vpop.f32.mrf.mxu1 }
 0x1cf   :  { %v1108_v32 = vpop.f32.mrf.mxu0 }
 0x1d0   :  { %v1365_v42 = vadd.f32 %v1364_v24, %v1108_v32  ;;  %v1380_v44 = vpop.f32.mrf.mxu1 }
 0x1d1   :  { %v1110_v43 = vpop.f32.mrf.mxu0 }
 0x1d2   :  { %1435 = vst.msk [vmem:[%s2526_s3 + $0x198] sm:$0xff] %vm1383_vm2, %v1365_v42  ;;  %v1381_v49 = vpop.f32.mrf.mxu1 }
 0x1d3   :  { %v1113_v48 = vpop.f32.mrf.mxu0 }
 0x1d4   :  { %v1370_v50 = vadd.f32 %v1369_v29, %v1113_v48 }
 0x1d5   :  { %v1115_v51 = vpop.f32.mrf.mxu0 }
 0x1d6   :  { %1436 = vst.msk [vmem:[%s2526_s3 + $0x1a0] sm:$0xff] %vm1383_vm2, %v1370_v50 }
 0x1d7   :  { %v1116_v52 = vpop.f32.mrf.mxu0 }
 0x1d8   :  { %v1373_v53 = vadd.f32 %v1372_v34, %v1116_v52 }
 0x1d9   :  { %v1118_v54 = vpop.f32.mrf.mxu0 }
 0x1da   :  { %1437 = vst.msk [vmem:[%s2526_s3 + $0x1a8] sm:$0xff] %vm1383_vm2, %v1373_v53 }
 0x1db   :  { %v1121_v55 = vpop.f32.mrf.mxu0 }
 0x1dc   :  { %v1378_v56 = vadd.f32 %v1377_v39, %v1121_v55 }
 0x1dd   :  { %v1123_v58 = vpop.f32.mrf.mxu0 }
 0x1de   :  { %1438 = vst.msk [vmem:[%s2526_s3 + $0x1b0] sm:$0xff] %vm1383_vm2, %v1378_v56 }
 0x1df   :  { %v1124_v59 = vpop.f32.mrf.mxu0 }
 0x1e1   :  { %v1125_v60 = vpop.f32.mrf.mxu0 }

</bundles_post_ra>
